<compile_context>
chip_gen: v6e
topology: v6e:2x2x1
jax: 0.10.0
libtpu: 0.0.40
codegen_flags: <defaults>
</compile_context>

<pallas_src>
import math
import functools

import jax
import jax.numpy as jnp
from jax import lax
from jax.experimental import pallas as pl
from jax.experimental.pallas import tpu as pltpu


# ----------------------------------------------------------------------------
# Pallas LSTM kernel (single layer, zero initial state, PyTorch gate order)
# ----------------------------------------------------------------------------
def _lstm_kernel(x_ref, wih_ref, whh_ref, b_ref,      # inputs
                 out_ref, hT_ref, cT_ref,              # outputs
                 h_scr, c_scr, xg_scr,                 # VMEM scratch
                 *, t_total):
    # x_ref:   [TC, B_BLK, Din]  time-chunk, time-major
    # wih_ref: [Din, 4H]         fused input weights, gate order i|f|g|o
    # whh_ref: [H, 4H]           fused recurrent weights
    # b_ref:   [1, 4H]           b_ih + b_hh
    # out_ref: [TC, B_BLK, H]
    # hT_ref/cT_ref: [B_BLK, H]  final hidden / cell state
    # h_scr/c_scr:   [B_BLK, H]  carry across time chunks
    # xg_scr:  [TC, B_BLK, 4H]   hoisted input-projection results
    t_chunk = pl.program_id(1)
    TC, B, Din = x_ref.shape
    H = whh_ref.shape[0]
    G = whh_ref.shape[1]  # 4H

    # (re)initialize the carried state at the first time chunk of each batch block
    @pl.when(t_chunk == 0)
    def _():
        h_scr[...] = jnp.zeros_like(h_scr)
        c_scr[...] = jnp.zeros_like(c_scr)

    # Hoisted input projection: one MXU-friendly GEMM for the whole chunk.
    # Reshape [TC, B, Din] -> [TC*B, Din] is layout-free (B is a multiple of 8).
    x_flat = x_ref[...].reshape(TC * B, Din)
    xg = jnp.dot(x_flat, wih_ref[...], preferred_element_type=jnp.float32)
    xg = xg + b_ref[...]                       # bias added once per chunk
    xg_scr[...] = xg.reshape(TC, B, G)

    whh = whh_ref[...]                         # resident recurrent weights

    def step(t, carry):
        h, c = carry
        # Only the [B, H] x [H, 4H] matmul remains on the sequential path.
        g = xg_scr[t] + jnp.dot(h, whh, preferred_element_type=jnp.float32)
        i_g = jax.nn.sigmoid(g[:, 0:H])
        f_g = jax.nn.sigmoid(g[:, H:2 * H])
        g_g = jnp.tanh(g[:, 2 * H:3 * H])
        o_g = jax.nn.sigmoid(g[:, 3 * H:4 * H])
        c_new = f_g * c + i_g * g_g
        h_new = o_g * jnp.tanh(c_new)
        # Mask out padded tail steps of a partial last chunk (keeps h/c exact).
        valid = (t_chunk * TC + t) < t_total
        h_new = jnp.where(valid, h_new, h)
        c_new = jnp.where(valid, c_new, c)
        out_ref[t] = h_new
        return (h_new, c_new)

    h_f, c_f = lax.fori_loop(0, TC, step, (h_scr[...], c_scr[...]), unroll=True)

    # carry to the next chunk + expose final states (last chunk's value wins)
    h_scr[...] = h_f
    c_scr[...] = c_f
    hT_ref[...] = h_f
    cT_ref[...] = c_f


_TC_MAX = 32  # time-chunk length (bounds VMEM, enables chunk double-buffering)


def lstm_pallas(x_tm, wih, whh, b):
    """x_tm: [T_d, B_pad, Din] -> (outs [T_d, B_pad, H], h_T, c_T [B_pad, H])."""
    T_d, B_pad, Din = x_tm.shape
    H = whh.shape[0]
    G = whh.shape[1]
    assert B_pad % 8 == 0

    TC = min(T_d, _TC_MAX)
    B_BLK = B_pad if B_pad <= 64 else 64
    assert B_pad % B_BLK == 0
    grid = (B_pad // B_BLK, pl.cdiv(T_d, TC))

    kernel = functools.partial(_lstm_kernel, t_total=T_d)

    return pl.pallas_call(
        kernel,
        grid_spec=pltpu.PrefetchScalarGridSpec(
            num_scalar_prefetch=0,
            grid=grid,
            in_specs=[
                pl.BlockSpec((TC, B_BLK, Din), lambda bb, tt: (tt, bb, 0)),
                pl.BlockSpec((Din, G), lambda bb, tt: (0, 0)),   # resident weights
                pl.BlockSpec((H, G), lambda bb, tt: (0, 0)),
                pl.BlockSpec((1, G), lambda bb, tt: (0, 0)),
            ],
            out_specs=(
                pl.BlockSpec((TC, B_BLK, H), lambda bb, tt: (tt, bb, 0)),
                pl.BlockSpec((B_BLK, H), lambda bb, tt: (bb, 0)),
                pl.BlockSpec((B_BLK, H), lambda bb, tt: (bb, 0)),
            ),
            scratch_shapes=[
                pltpu.VMEM((B_BLK, H), jnp.float32),       # h carry
                pltpu.VMEM((B_BLK, H), jnp.float32),       # c carry
                pltpu.VMEM((TC, B_BLK, G), jnp.float32),   # hoisted x-projections
            ],
        ),
        out_shape=(
            jax.ShapeDtypeStruct((T_d, B_pad, H), jnp.float32),
            jax.ShapeDtypeStruct((B_pad, H), jnp.float32),
            jax.ShapeDtypeStruct((B_pad, H), jnp.float32),
        ),
        compiler_params=pltpu.CompilerParams(
            dimension_semantics=("parallel", "arbitrary"),
            vmem_limit_bytes=32 * 1024 * 1024,
        ),
    )(x_tm, wih, whh, b)


# ----------------------------------------------------------------------------
# DRNN forward (dilation glue in plain JAX, LSTM recurrence in Pallas)
# ----------------------------------------------------------------------------
def _round_up(x, m):
    return (x + m - 1) // m * m


def drnn_forward(X, layer_params, dilations):
    """X: [B, T, in_dim] -> (h_states [B, T, H], new_h list of (h, c))."""
    B, T, _ = X.shape
    h_states = X
    new_h = []
    for (wih, whh, b), d in zip(layer_params, dilations):
        Din_l = h_states.shape[2]
        # pad_input (keyed off the original n_steps, matching the PyTorch code)
        if T % d != 0:
            dilated_steps = T // d + 1
            pad = dilated_steps * d - h_states.shape[1]
            z = jnp.zeros((B, pad, Din_l), h_states.dtype)
            h_states = jnp.concatenate([h_states, z], axis=1)
        T_pad_len = h_states.shape[1]
        T_d = T_pad_len // d

        # TODO(synk): move the dilation gather / de-interleave into the kernel's
        # index_map (scalar-prefetched offsets) to avoid these XLA relayout passes.
        # Dilation gather directly to time-major: x_tm[k, j*B + b] = h[b, k*d + j]
        x_tm = (h_states.reshape(B, T_d, d, Din_l)
                .transpose(1, 2, 0, 3)
                .reshape(T_d, d * B, Din_l))

        # pad the effective batch up to a sublane-friendly multiple of 8 (and of
        # the batch block when large)
        B_eff = d * B
        B_pad = _round_up(B_eff, 8)
        if B_pad > 64:
            B_pad = _round_up(B_pad, 64)
        if B_pad != B_eff:
            x_tm = jnp.concatenate(
                [x_tm, jnp.zeros((T_d, B_pad - B_eff, Din_l), x_tm.dtype)], axis=1)

        outs_tm, h_f, c_f = lstm_pallas(x_tm, wih, whh, b)
        h_f = h_f[:B_eff]
        c_f = c_f[:B_eff]
        new_h.append((h_f[None, :, :], c_f[None, :, :]))  # (1, B*d, H) like nn.LSTM

        outs_tm = outs_tm[:, :B_eff, :]
        H = outs_tm.shape[-1]
        # de-dilation interleave (intended semantics of split_outputs):
        # out[b, k*d + j] = outs_tm[k, j*B + b]
        h_states = (outs_tm.reshape(T_d, d, B, H)
                    .transpose(2, 0, 1, 3)
                    .reshape(B, T_d * d, H))[:, :T, :]
    return h_states, new_h


# ----------------------------------------------------------------------------
# Deterministic parameter init (nn.LSTM: U(-1/sqrt(H), 1/sqrt(H))), gate-fused
# ----------------------------------------------------------------------------
def init_lstm_params(key, in_dim, h_dim):
    k = 1.0 / math.sqrt(h_dim)
    k1, k2, k3, k4 = jax.random.split(key, 4)
    wih = jax.random.uniform(k1, (in_dim, 4 * h_dim), jnp.float32, -k, k)
    whh = jax.random.uniform(k2, (h_dim, 4 * h_dim), jnp.float32, -k, k)
    bih = jax.random.uniform(k3, (1, 4 * h_dim), jnp.float32, -k, k)
    bhh = jax.random.uniform(k4, (1, 4 * h_dim), jnp.float32, -k, k)
    return wih, whh, bih + bhh


# ----------------------------------------------------------------------------
# Pure-JAX reference (lax.scan LSTM, literal PyTorch-style gather) for checking
# ----------------------------------------------------------------------------
def lstm_ref(x_tm, wih, whh, b):
    _, Bd, _ = x_tm.shape
    H = whh.shape[0]
    h0 = jnp.zeros((Bd, H), jnp.float32)
    c0 = jnp.zeros((Bd, H), jnp.float32)

    def step(carry, x_t):
        h, c = carry
        g = x_t @ wih + h @ whh + b
        i_g = jax.nn.sigmoid(g[:, 0:H])
        f_g = jax.nn.sigmoid(g[:, H:2 * H])
        g_g = jnp.tanh(g[:, 2 * H:3 * H])
        o_g = jax.nn.sigmoid(g[:, 3 * H:4 * H])
        c_new = f_g * c + i_g * g_g
        h_new = o_g * jnp.tanh(c_new)
        return (h_new, c_new), h_new

    (h_f, c_f), outs = lax.scan(step, (h0, c0), x_tm)
    return outs, h_f, c_f


def drnn_forward_ref(X, layer_params, dilations):
    B, T, _ = X.shape
    h_states = X
    new_h = []
    for (wih, whh, b), d in zip(layer_params, dilations):
        if T % d != 0:
            dilated_steps = T // d + 1
            pad = dilated_steps * d - h_states.shape[1]
            z = jnp.zeros((h_states.shape[0], pad, h_states.shape[2]), h_states.dtype)
            h_states = jnp.concatenate([h_states, z], axis=1)
        dilated = jnp.concatenate([h_states[:, j::d, :] for j in range(d)], axis=0)
        x_tm = jnp.transpose(dilated, (1, 0, 2))
        outs_tm, h_f, c_f = lstm_ref(x_tm, wih, whh, b)
        new_h.append((h_f[None], c_f[None]))
        outs = jnp.transpose(outs_tm, (1, 0, 2))
        bs = outs.shape[0] // d
        T_d, H = outs.shape[1], outs.shape[2]
        blocks = jnp.stack([outs[i * bs:(i + 1) * bs] for i in range(d)], axis=0)
        h_states = jnp.transpose(blocks, (1, 2, 0, 3)).reshape(bs, T_d * d, H)[:, :T, :]
    return h_states, new_h


if __name__ == "__main__":
    # Small shapes consistent with the module: batch=2, seq=8, in_dim=16,
    # hidden=32, n_layers=3 (dilations 1, 2, 4).
    B, T, in_dim, h_dim, n_layers = 2, 8, 16, 32, 3
    dilations = [2 ** i for i in range(n_layers)]

    key = jax.random.PRNGKey(0)
    kx, kp = jax.random.split(key)
    X = jax.random.normal(kx, (B, T, in_dim), jnp.float32)

    layer_params = []
    pkeys = jax.random.split(kp, n_layers)
    for i in range(n_layers):
        d_in = in_dim if i == 0 else h_dim
        layer_params.append(init_lstm_params(pkeys[i], d_in, h_dim))

    fwd = jax.jit(lambda x, p: drnn_forward(x, p, dilations))
    out, new_h = fwd(X, layer_params)
    out = jax.block_until_ready(out)
    for (h, c) in new_h:
        jax.block_until_ready(h)
        jax.block_until_ready(c)

    # sanity shapes
    assert out.shape == (B, T, h_dim)
    for (h, c), d in zip(new_h, dilations):
        assert h.shape == (1, B * d, h_dim) and c.shape == (1, B * d, h_dim)

    # correctness vs pure-JAX reference
    ref_out, ref_new_h = drnn_forward_ref(X, layer_params, dilations)
    ref_out = jax.block_until_ready(ref_out)
    assert jnp.allclose(out, ref_out, rtol=1e-3, atol=1e-3), \
        float(jnp.max(jnp.abs(out - ref_out)))
    for (h, c), (rh, rc) in zip(new_h, ref_new_h):
        assert jnp.allclose(h, rh, rtol=1e-3, atol=1e-3)
        assert jnp.allclose(c, rc, rtol=1e-3, atol=1e-3)

    print("KERNEL_OK")
</pallas_src>

<mosaic_0001>
module attributes {stable_mosaic.version = 11 : i64} {
  func.func @_lstm_kernel(%arg0: i32, %arg1: i32, %arg2: memref<8x8x16xf32, #tpu.memory_space<vmem>>, %arg3: memref<16x128xf32, #tpu.memory_space<vmem>>, %arg4: memref<32x128xf32, #tpu.memory_space<vmem>>, %arg5: memref<1x128xf32, #tpu.memory_space<vmem>>, %arg6: memref<8x8x32xf32, #tpu.memory_space<vmem>>, %arg7: memref<8x32xf32, #tpu.memory_space<vmem>>, %arg8: memref<8x32xf32, #tpu.memory_space<vmem>>, %arg9: memref<8x32xf32, #tpu.memory_space<vmem>>, %arg10: memref<8x32xf32, #tpu.memory_space<vmem>>, %arg11: memref<8x8x128xf32, #tpu.memory_space<vmem>>) attributes {dimension_semantics = [#tpu.dimension_semantics<parallel>, #tpu.dimension_semantics<arbitrary>], iteration_bounds = array<i64: 1, 1>, scalar_prefetch = 0 : i64, scratch_operands = 3 : i64, tpu.core_type = #tpu.core_type<tc>, window_params = [{transform_indices = @transform_0, window_bounds = array<i64: 8, 8, 16>}, {pipeline_mode = #tpu.pipeline_mode<synchronous>, transform_indices = @transform_1, window_bounds = array<i64: 16, 128>}, {pipeline_mode = #tpu.pipeline_mode<synchronous>, transform_indices = @transform_2, window_bounds = array<i64: 32, 128>}, {pipeline_mode = #tpu.pipeline_mode<synchronous>, transform_indices = @transform_3, window_bounds = array<i64: 1, 128>}, {transform_indices = @transform_4, window_bounds = array<i64: 8, 8, 32>}, {transform_indices = @transform_5, window_bounds = array<i64: 8, 32>}, {transform_indices = @transform_6, window_bounds = array<i64: 8, 32>}]} {
    %c0_i32 = arith.constant 0 : i32
    %0 = arith.cmpi eq, %arg1, %c0_i32 : i32
    %1 = arith.extui %0 : i1 to i32
    %c0_i32_0 = arith.constant 0 : i32
    %2 = arith.cmpi ne, %1, %c0_i32_0 : i32
    scf.if %2 {
      %cst_105 = arith.constant 0.000000e+00 : f32
      %331 = vector.broadcast %cst_105 : f32 to vector<8x32xf32>
      %c0_106 = arith.constant 0 : index
      %c0_107 = arith.constant 0 : index
      %332 = vector.load %arg9[%c0_106, %c0_107] : memref<8x32xf32, #tpu.memory_space<vmem>>, vector<8x32xf32>
      tpu.vector_store %arg9[%c0_106, %c0_107], %331 {strides = array<i32>} : memref<8x32xf32, #tpu.memory_space<vmem>>, vector<8x32xf32>,
      %cst_108 = arith.constant 0.000000e+00 : f32
      %333 = vector.broadcast %cst_108 : f32 to vector<8x32xf32>
      %c0_109 = arith.constant 0 : index
      %c0_110 = arith.constant 0 : index
      %334 = vector.load %arg10[%c0_109, %c0_110] : memref<8x32xf32, #tpu.memory_space<vmem>>, vector<8x32xf32>
      tpu.vector_store %arg10[%c0_109, %c0_110], %333 {strides = array<i32>} : memref<8x32xf32, #tpu.memory_space<vmem>>, vector<8x32xf32>,
    } else {
    }
    %c0 = arith.constant 0 : index
    %c0_1 = arith.constant 0 : index
    %c0_2 = arith.constant 0 : index
    %3 = vector.load %arg2[%c0, %c0_1, %c0_2] : memref<8x8x16xf32, #tpu.memory_space<vmem>>, vector<8x8x16xf32>
    %4 = vector.shape_cast %3 : vector<8x8x16xf32> to vector<64x16xf32>
    %c0_3 = arith.constant 0 : index
    %c0_4 = arith.constant 0 : index
    %5 = vector.load %arg3[%c0_3, %c0_4] : memref<16x128xf32, #tpu.memory_space<vmem>>, vector<16x128xf32>
    %cst = arith.constant dense<0.000000e+00> : vector<64x128xf32>
    %6 = tpu.matmul %4, %5, %cst {dimension_numbers = #tpu.dot_dimension_numbers<[1], [0], [0], [1], [0, 0, 1, 1], [], []>} : vector<64x16xf32>, vector<16x128xf32>, vector<64x128xf32> -> vector<64x128xf32>
    %c0_5 = arith.constant 0 : index
    %c0_6 = arith.constant 0 : index
    %7 = vector.load %arg5[%c0_5, %c0_6] : memref<1x128xf32, #tpu.memory_space<vmem>>, vector<1x128xf32>
    %8 = vector.broadcast %7 : vector<1x128xf32> to vector<64x128xf32>
    %9 = arith.addf %6, %8 : vector<64x128xf32>
    %10 = vector.shape_cast %9 : vector<64x128xf32> to vector<8x8x128xf32>
    %c0_7 = arith.constant 0 : index
    %c0_8 = arith.constant 0 : index
    %c0_9 = arith.constant 0 : index
    %11 = vector.load %arg11[%c0_7, %c0_8, %c0_9] : memref<8x8x128xf32, #tpu.memory_space<vmem>>, vector<8x8x128xf32>
    tpu.vector_store %arg11[%c0_7, %c0_8, %c0_9], %10 {strides = array<i32>} : memref<8x8x128xf32, #tpu.memory_space<vmem>>, vector<8x8x128xf32>,
    %c0_10 = arith.constant 0 : index
    %c0_11 = arith.constant 0 : index
    %12 = vector.load %arg4[%c0_10, %c0_11] : memref<32x128xf32, #tpu.memory_space<vmem>>, vector<32x128xf32>
    %c0_12 = arith.constant 0 : index
    %c0_13 = arith.constant 0 : index
    %13 = vector.load %arg9[%c0_12, %c0_13] : memref<8x32xf32, #tpu.memory_space<vmem>>, vector<8x32xf32>
    %c0_14 = arith.constant 0 : index
    %c0_15 = arith.constant 0 : index
    %14 = vector.load %arg10[%c0_14, %c0_15] : memref<8x32xf32, #tpu.memory_space<vmem>>, vector<8x32xf32>
    %c0_i32_16 = arith.constant 0 : i32
    %15 = arith.index_cast %c0_i32_16 : i32 to index
    %c0_17 = arith.constant 0 : index
    %c0_18 = arith.constant 0 : index
    %16 = vector.load %arg11[%15, %c0_17, %c0_18] : memref<8x8x128xf32, #tpu.memory_space<vmem>>, vector<1x8x128xf32>
    %17 = vector.shape_cast %16 : vector<1x8x128xf32> to vector<8x128xf32>
    %cst_19 = arith.constant dense<0.000000e+00> : vector<8x128xf32>
    %18 = tpu.matmul %13, %12, %cst_19 {dimension_numbers = #tpu.dot_dimension_numbers<[1], [0], [0], [1], [0, 0, 1, 1], [], []>} : vector<8x32xf32>, vector<32x128xf32>, vector<8x128xf32> -> vector<8x128xf32>
    %19 = arith.addf %17, %18 : vector<8x128xf32>
    %20 = vector.extract_strided_slice %19 {offsets = [0, 0], sizes = [8, 32], strides = [1, 1]} : vector<8x128xf32> to vector<8x32xf32>
    %21 = arith.negf %20 : vector<8x32xf32>
    %22 = math.exp %21 : vector<8x32xf32>
    %cst_20 = arith.constant 1.000000e+00 : f32
    %23 = vector.broadcast %cst_20 : f32 to vector<8x32xf32>
    %24 = arith.addf %23, %22 : vector<8x32xf32>
    %25 = arith.divf %23, %24 : vector<8x32xf32>
    %26 = vector.extract_strided_slice %19 {offsets = [0, 32], sizes = [8, 32], strides = [1, 1]} : vector<8x128xf32> to vector<8x32xf32>
    %27 = arith.negf %26 : vector<8x32xf32>
    %28 = math.exp %27 : vector<8x32xf32>
    %cst_21 = arith.constant 1.000000e+00 : f32
    %29 = vector.broadcast %cst_21 : f32 to vector<8x32xf32>
    %30 = arith.addf %29, %28 : vector<8x32xf32>
    %31 = arith.divf %29, %30 : vector<8x32xf32>
    %32 = vector.extract_strided_slice %19 {offsets = [0, 64], sizes = [8, 32], strides = [1, 1]} : vector<8x128xf32> to vector<8x32xf32>
    %33 = math.tanh %32 : vector<8x32xf32>
    %34 = vector.extract_strided_slice %19 {offsets = [0, 96], sizes = [8, 32], strides = [1, 1]} : vector<8x128xf32> to vector<8x32xf32>
    %35 = arith.negf %34 : vector<8x32xf32>
    %36 = math.exp %35 : vector<8x32xf32>
    %cst_22 = arith.constant 1.000000e+00 : f32
    %37 = vector.broadcast %cst_22 : f32 to vector<8x32xf32>
    %38 = arith.addf %37, %36 : vector<8x32xf32>
    %39 = arith.divf %37, %38 : vector<8x32xf32>
    %40 = arith.mulf %31, %14 : vector<8x32xf32>
    %41 = arith.mulf %25, %33 : vector<8x32xf32>
    %42 = arith.addf %40, %41 : vector<8x32xf32>
    %43 = math.tanh %42 : vector<8x32xf32>
    %44 = arith.mulf %39, %43 : vector<8x32xf32>
    %c8_i32 = arith.constant 8 : i32
    %45 = arith.muli %arg1, %c8_i32 : i32
    %46 = arith.addi %45, %c0_i32_16 : i32
    %c8_i32_23 = arith.constant 8 : i32
    %47 = arith.cmpi slt, %46, %c8_i32_23 : i32
    %48 = arith.select %47, %44, %13 : vector<8x32xf32>
    %49 = arith.select %47, %42, %14 : vector<8x32xf32>
    %50 = arith.index_cast %c0_i32_16 : i32 to index
    %c0_24 = arith.constant 0 : index
    %c0_25 = arith.constant 0 : index
    %51 = vector.load %arg6[%50, %c0_24, %c0_25] : memref<8x8x32xf32, #tpu.memory_space<vmem>>, vector<1x8x32xf32>
    %52 = vector.shape_cast %51 : vector<1x8x32xf32> to vector<8x32xf32>
    %53 = vector.shape_cast %48 : vector<8x32xf32> to vector<1x8x32xf32>
    tpu.vector_store %arg6[%50, %c0_24, %c0_25], %53 {strides = array<i32>} : memref<8x8x32xf32, #tpu.memory_space<vmem>>, vector<1x8x32xf32>,
    %c1_i32 = arith.constant 1 : i32
    %54 = arith.index_cast %c1_i32 : i32 to index
    %c0_26 = arith.constant 0 : index
    %c0_27 = arith.constant 0 : index
    %55 = vector.load %arg11[%54, %c0_26, %c0_27] : memref<8x8x128xf32, #tpu.memory_space<vmem>>, vector<1x8x128xf32>
    %56 = vector.shape_cast %55 : vector<1x8x128xf32> to vector<8x128xf32>
    %cst_28 = arith.constant dense<0.000000e+00> : vector<8x128xf32>
    %57 = tpu.matmul %48, %12, %cst_28 {dimension_numbers = #tpu.dot_dimension_numbers<[1], [0], [0], [1], [0, 0, 1, 1], [], []>} : vector<8x32xf32>, vector<32x128xf32>, vector<8x128xf32> -> vector<8x128xf32>
    %58 = arith.addf %56, %57 : vector<8x128xf32>
    %59 = vector.extract_strided_slice %58 {offsets = [0, 0], sizes = [8, 32], strides = [1, 1]} : vector<8x128xf32> to vector<8x32xf32>
    %60 = arith.negf %59 : vector<8x32xf32>
    %61 = math.exp %60 : vector<8x32xf32>
    %cst_29 = arith.constant 1.000000e+00 : f32
    %62 = vector.broadcast %cst_29 : f32 to vector<8x32xf32>
    %63 = arith.addf %62, %61 : vector<8x32xf32>
    %64 = arith.divf %62, %63 : vector<8x32xf32>
    %65 = vector.extract_strided_slice %58 {offsets = [0, 32], sizes = [8, 32], strides = [1, 1]} : vector<8x128xf32> to vector<8x32xf32>
    %66 = arith.negf %65 : vector<8x32xf32>
    %67 = math.exp %66 : vector<8x32xf32>
    %cst_30 = arith.constant 1.000000e+00 : f32
    %68 = vector.broadcast %cst_30 : f32 to vector<8x32xf32>
    %69 = arith.addf %68, %67 : vector<8x32xf32>
    %70 = arith.divf %68, %69 : vector<8x32xf32>
    %71 = vector.extract_strided_slice %58 {offsets = [0, 64], sizes = [8, 32], strides = [1, 1]} : vector<8x128xf32> to vector<8x32xf32>
    %72 = math.tanh %71 : vector<8x32xf32>
    %73 = vector.extract_strided_slice %58 {offsets = [0, 96], sizes = [8, 32], strides = [1, 1]} : vector<8x128xf32> to vector<8x32xf32>
    %74 = arith.negf %73 : vector<8x32xf32>
    %75 = math.exp %74 : vector<8x32xf32>
    %cst_31 = arith.constant 1.000000e+00 : f32
    %76 = vector.broadcast %cst_31 : f32 to vector<8x32xf32>
    %77 = arith.addf %76, %75 : vector<8x32xf32>
    %78 = arith.divf %76, %77 : vector<8x32xf32>
    %79 = arith.mulf %70, %49 : vector<8x32xf32>
    %80 = arith.mulf %64, %72 : vector<8x32xf32>
    %81 = arith.addf %79, %80 : vector<8x32xf32>
    %82 = math.tanh %81 : vector<8x32xf32>
    %83 = arith.mulf %78, %82 : vector<8x32xf32>
    %c8_i32_32 = arith.constant 8 : i32
    %84 = arith.muli %arg1, %c8_i32_32 : i32
    %85 = arith.addi %84, %c1_i32 : i32
    %c8_i32_33 = arith.constant 8 : i32
    %86 = arith.cmpi slt, %85, %c8_i32_33 : i32
    %87 = arith.select %86, %83, %48 : vector<8x32xf32>
    %88 = arith.select %86, %81, %49 : vector<8x32xf32>
    %89 = arith.index_cast %c1_i32 : i32 to index
    %c0_34 = arith.constant 0 : index
    %c0_35 = arith.constant 0 : index
    %90 = vector.load %arg6[%89, %c0_34, %c0_35] : memref<8x8x32xf32, #tpu.memory_space<vmem>>, vector<1x8x32xf32>
    %91 = vector.shape_cast %90 : vector<1x8x32xf32> to vector<8x32xf32>
    %92 = vector.shape_cast %87 : vector<8x32xf32> to vector<1x8x32xf32>
    tpu.vector_store %arg6[%89, %c0_34, %c0_35], %92 {strides = array<i32>} : memref<8x8x32xf32, #tpu.memory_space<vmem>>, vector<1x8x32xf32>,
    %c2_i32 = arith.constant 2 : i32
    %93 = arith.index_cast %c2_i32 : i32 to index
    %c0_36 = arith.constant 0 : index
    %c0_37 = arith.constant 0 : index
    %94 = vector.load %arg11[%93, %c0_36, %c0_37] : memref<8x8x128xf32, #tpu.memory_space<vmem>>, vector<1x8x128xf32>
    %95 = vector.shape_cast %94 : vector<1x8x128xf32> to vector<8x128xf32>
    %cst_38 = arith.constant dense<0.000000e+00> : vector<8x128xf32>
    %96 = tpu.matmul %87, %12, %cst_38 {dimension_numbers = #tpu.dot_dimension_numbers<[1], [0], [0], [1], [0, 0, 1, 1], [], []>} : vector<8x32xf32>, vector<32x128xf32>, vector<8x128xf32> -> vector<8x128xf32>
    %97 = arith.addf %95, %96 : vector<8x128xf32>
    %98 = vector.extract_strided_slice %97 {offsets = [0, 0], sizes = [8, 32], strides = [1, 1]} : vector<8x128xf32> to vector<8x32xf32>
    %99 = arith.negf %98 : vector<8x32xf32>
    %100 = math.exp %99 : vector<8x32xf32>
    %cst_39 = arith.constant 1.000000e+00 : f32
    %101 = vector.broadcast %cst_39 : f32 to vector<8x32xf32>
    %102 = arith.addf %101, %100 : vector<8x32xf32>
    %103 = arith.divf %101, %102 : vector<8x32xf32>
    %104 = vector.extract_strided_slice %97 {offsets = [0, 32], sizes = [8, 32], strides = [1, 1]} : vector<8x128xf32> to vector<8x32xf32>
    %105 = arith.negf %104 : vector<8x32xf32>
    %106 = math.exp %105 : vector<8x32xf32>
    %cst_40 = arith.constant 1.000000e+00 : f32
    %107 = vector.broadcast %cst_40 : f32 to vector<8x32xf32>
    %108 = arith.addf %107, %106 : vector<8x32xf32>
    %109 = arith.divf %107, %108 : vector<8x32xf32>
    %110 = vector.extract_strided_slice %97 {offsets = [0, 64], sizes = [8, 32], strides = [1, 1]} : vector<8x128xf32> to vector<8x32xf32>
    %111 = math.tanh %110 : vector<8x32xf32>
    %112 = vector.extract_strided_slice %97 {offsets = [0, 96], sizes = [8, 32], strides = [1, 1]} : vector<8x128xf32> to vector<8x32xf32>
    %113 = arith.negf %112 : vector<8x32xf32>
    %114 = math.exp %113 : vector<8x32xf32>
    %cst_41 = arith.constant 1.000000e+00 : f32
    %115 = vector.broadcast %cst_41 : f32 to vector<8x32xf32>
    %116 = arith.addf %115, %114 : vector<8x32xf32>
    %117 = arith.divf %115, %116 : vector<8x32xf32>
    %118 = arith.mulf %109, %88 : vector<8x32xf32>
    %119 = arith.mulf %103, %111 : vector<8x32xf32>
    %120 = arith.addf %118, %119 : vector<8x32xf32>
    %121 = math.tanh %120 : vector<8x32xf32>
    %122 = arith.mulf %117, %121 : vector<8x32xf32>
    %c8_i32_42 = arith.constant 8 : i32
    %123 = arith.muli %arg1, %c8_i32_42 : i32
    %124 = arith.addi %123, %c2_i32 : i32
    %c8_i32_43 = arith.constant 8 : i32
    %125 = arith.cmpi slt, %124, %c8_i32_43 : i32
    %126 = arith.select %125, %122, %87 : vector<8x32xf32>
    %127 = arith.select %125, %120, %88 : vector<8x32xf32>
    %128 = arith.index_cast %c2_i32 : i32 to index
    %c0_44 = arith.constant 0 : index
    %c0_45 = arith.constant 0 : index
    %129 = vector.load %arg6[%128, %c0_44, %c0_45] : memref<8x8x32xf32, #tpu.memory_space<vmem>>, vector<1x8x32xf32>
    %130 = vector.shape_cast %129 : vector<1x8x32xf32> to vector<8x32xf32>
    %131 = vector.shape_cast %126 : vector<8x32xf32> to vector<1x8x32xf32>
    tpu.vector_store %arg6[%128, %c0_44, %c0_45], %131 {strides = array<i32>} : memref<8x8x32xf32, #tpu.memory_space<vmem>>, vector<1x8x32xf32>,
    %c3_i32 = arith.constant 3 : i32
    %132 = arith.index_cast %c3_i32 : i32 to index
    %c0_46 = arith.constant 0 : index
    %c0_47 = arith.constant 0 : index
    %133 = vector.load %arg11[%132, %c0_46, %c0_47] : memref<8x8x128xf32, #tpu.memory_space<vmem>>, vector<1x8x128xf32>
    %134 = vector.shape_cast %133 : vector<1x8x128xf32> to vector<8x128xf32>
    %cst_48 = arith.constant dense<0.000000e+00> : vector<8x128xf32>
    %135 = tpu.matmul %126, %12, %cst_48 {dimension_numbers = #tpu.dot_dimension_numbers<[1], [0], [0], [1], [0, 0, 1, 1], [], []>} : vector<8x32xf32>, vector<32x128xf32>, vector<8x128xf32> -> vector<8x128xf32>
    %136 = arith.addf %134, %135 : vector<8x128xf32>
    %137 = vector.extract_strided_slice %136 {offsets = [0, 0], sizes = [8, 32], strides = [1, 1]} : vector<8x128xf32> to vector<8x32xf32>
    %138 = arith.negf %137 : vector<8x32xf32>
    %139 = math.exp %138 : vector<8x32xf32>
    %cst_49 = arith.constant 1.000000e+00 : f32
    %140 = vector.broadcast %cst_49 : f32 to vector<8x32xf32>
    %141 = arith.addf %140, %139 : vector<8x32xf32>
    %142 = arith.divf %140, %141 : vector<8x32xf32>
    %143 = vector.extract_strided_slice %136 {offsets = [0, 32], sizes = [8, 32], strides = [1, 1]} : vector<8x128xf32> to vector<8x32xf32>
    %144 = arith.negf %143 : vector<8x32xf32>
    %145 = math.exp %144 : vector<8x32xf32>
    %cst_50 = arith.constant 1.000000e+00 : f32
    %146 = vector.broadcast %cst_50 : f32 to vector<8x32xf32>
    %147 = arith.addf %146, %145 : vector<8x32xf32>
    %148 = arith.divf %146, %147 : vector<8x32xf32>
    %149 = vector.extract_strided_slice %136 {offsets = [0, 64], sizes = [8, 32], strides = [1, 1]} : vector<8x128xf32> to vector<8x32xf32>
    %150 = math.tanh %149 : vector<8x32xf32>
    %151 = vector.extract_strided_slice %136 {offsets = [0, 96], sizes = [8, 32], strides = [1, 1]} : vector<8x128xf32> to vector<8x32xf32>
    %152 = arith.negf %151 : vector<8x32xf32>
    %153 = math.exp %152 : vector<8x32xf32>
    %cst_51 = arith.constant 1.000000e+00 : f32
    %154 = vector.broadcast %cst_51 : f32 to vector<8x32xf32>
    %155 = arith.addf %154, %153 : vector<8x32xf32>
    %156 = arith.divf %154, %155 : vector<8x32xf32>
    %157 = arith.mulf %148, %127 : vector<8x32xf32>
    %158 = arith.mulf %142, %150 : vector<8x32xf32>
    %159 = arith.addf %157, %158 : vector<8x32xf32>
    %160 = math.tanh %159 : vector<8x32xf32>
    %161 = arith.mulf %156, %160 : vector<8x32xf32>
    %c8_i32_52 = arith.constant 8 : i32
    %162 = arith.muli %arg1, %c8_i32_52 : i32
    %163 = arith.addi %162, %c3_i32 : i32
    %c8_i32_53 = arith.constant 8 : i32
    %164 = arith.cmpi slt, %163, %c8_i32_53 : i32
    %165 = arith.select %164, %161, %126 : vector<8x32xf32>
    %166 = arith.select %164, %159, %127 : vector<8x32xf32>
    %167 = arith.index_cast %c3_i32 : i32 to index
    %c0_54 = arith.constant 0 : index
    %c0_55 = arith.constant 0 : index
    %168 = vector.load %arg6[%167, %c0_54, %c0_55] : memref<8x8x32xf32, #tpu.memory_space<vmem>>, vector<1x8x32xf32>
    %169 = vector.shape_cast %168 : vector<1x8x32xf32> to vector<8x32xf32>
    %170 = vector.shape_cast %165 : vector<8x32xf32> to vector<1x8x32xf32>
    tpu.vector_store %arg6[%167, %c0_54, %c0_55], %170 {strides = array<i32>} : memref<8x8x32xf32, #tpu.memory_space<vmem>>, vector<1x8x32xf32>,
    %c4_i32 = arith.constant 4 : i32
    %171 = arith.index_cast %c4_i32 : i32 to index
    %c0_56 = arith.constant 0 : index
    %c0_57 = arith.constant 0 : index
    %172 = vector.load %arg11[%171, %c0_56, %c0_57] : memref<8x8x128xf32, #tpu.memory_space<vmem>>, vector<1x8x128xf32>
    %173 = vector.shape_cast %172 : vector<1x8x128xf32> to vector<8x128xf32>
    %cst_58 = arith.constant dense<0.000000e+00> : vector<8x128xf32>
    %174 = tpu.matmul %165, %12, %cst_58 {dimension_numbers = #tpu.dot_dimension_numbers<[1], [0], [0], [1], [0, 0, 1, 1], [], []>} : vector<8x32xf32>, vector<32x128xf32>, vector<8x128xf32> -> vector<8x128xf32>
    %175 = arith.addf %173, %174 : vector<8x128xf32>
    %176 = vector.extract_strided_slice %175 {offsets = [0, 0], sizes = [8, 32], strides = [1, 1]} : vector<8x128xf32> to vector<8x32xf32>
    %177 = arith.negf %176 : vector<8x32xf32>
    %178 = math.exp %177 : vector<8x32xf32>
    %cst_59 = arith.constant 1.000000e+00 : f32
    %179 = vector.broadcast %cst_59 : f32 to vector<8x32xf32>
    %180 = arith.addf %179, %178 : vector<8x32xf32>
    %181 = arith.divf %179, %180 : vector<8x32xf32>
    %182 = vector.extract_strided_slice %175 {offsets = [0, 32], sizes = [8, 32], strides = [1, 1]} : vector<8x128xf32> to vector<8x32xf32>
    %183 = arith.negf %182 : vector<8x32xf32>
    %184 = math.exp %183 : vector<8x32xf32>
    %cst_60 = arith.constant 1.000000e+00 : f32
    %185 = vector.broadcast %cst_60 : f32 to vector<8x32xf32>
    %186 = arith.addf %185, %184 : vector<8x32xf32>
    %187 = arith.divf %185, %186 : vector<8x32xf32>
    %188 = vector.extract_strided_slice %175 {offsets = [0, 64], sizes = [8, 32], strides = [1, 1]} : vector<8x128xf32> to vector<8x32xf32>
    %189 = math.tanh %188 : vector<8x32xf32>
    %190 = vector.extract_strided_slice %175 {offsets = [0, 96], sizes = [8, 32], strides = [1, 1]} : vector<8x128xf32> to vector<8x32xf32>
    %191 = arith.negf %190 : vector<8x32xf32>
    %192 = math.exp %191 : vector<8x32xf32>
    %cst_61 = arith.constant 1.000000e+00 : f32
    %193 = vector.broadcast %cst_61 : f32 to vector<8x32xf32>
    %194 = arith.addf %193, %192 : vector<8x32xf32>
    %195 = arith.divf %193, %194 : vector<8x32xf32>
    %196 = arith.mulf %187, %166 : vector<8x32xf32>
    %197 = arith.mulf %181, %189 : vector<8x32xf32>
    %198 = arith.addf %196, %197 : vector<8x32xf32>
    %199 = math.tanh %198 : vector<8x32xf32>
    %200 = arith.mulf %195, %199 : vector<8x32xf32>
    %c8_i32_62 = arith.constant 8 : i32
    %201 = arith.muli %arg1, %c8_i32_62 : i32
    %202 = arith.addi %201, %c4_i32 : i32
    %c8_i32_63 = arith.constant 8 : i32
    %203 = arith.cmpi slt, %202, %c8_i32_63 : i32
    %204 = arith.select %203, %200, %165 : vector<8x32xf32>
    %205 = arith.select %203, %198, %166 : vector<8x32xf32>
    %206 = arith.index_cast %c4_i32 : i32 to index
    %c0_64 = arith.constant 0 : index
    %c0_65 = arith.constant 0 : index
    %207 = vector.load %arg6[%206, %c0_64, %c0_65] : memref<8x8x32xf32, #tpu.memory_space<vmem>>, vector<1x8x32xf32>
    %208 = vector.shape_cast %207 : vector<1x8x32xf32> to vector<8x32xf32>
    %209 = vector.shape_cast %204 : vector<8x32xf32> to vector<1x8x32xf32>
    tpu.vector_store %arg6[%206, %c0_64, %c0_65], %209 {strides = array<i32>} : memref<8x8x32xf32, #tpu.memory_space<vmem>>, vector<1x8x32xf32>,
    %c5_i32 = arith.constant 5 : i32
    %210 = arith.index_cast %c5_i32 : i32 to index
    %c0_66 = arith.constant 0 : index
    %c0_67 = arith.constant 0 : index
    %211 = vector.load %arg11[%210, %c0_66, %c0_67] : memref<8x8x128xf32, #tpu.memory_space<vmem>>, vector<1x8x128xf32>
    %212 = vector.shape_cast %211 : vector<1x8x128xf32> to vector<8x128xf32>
    %cst_68 = arith.constant dense<0.000000e+00> : vector<8x128xf32>
    %213 = tpu.matmul %204, %12, %cst_68 {dimension_numbers = #tpu.dot_dimension_numbers<[1], [0], [0], [1], [0, 0, 1, 1], [], []>} : vector<8x32xf32>, vector<32x128xf32>, vector<8x128xf32> -> vector<8x128xf32>
    %214 = arith.addf %212, %213 : vector<8x128xf32>
    %215 = vector.extract_strided_slice %214 {offsets = [0, 0], sizes = [8, 32], strides = [1, 1]} : vector<8x128xf32> to vector<8x32xf32>
    %216 = arith.negf %215 : vector<8x32xf32>
    %217 = math.exp %216 : vector<8x32xf32>
    %cst_69 = arith.constant 1.000000e+00 : f32
    %218 = vector.broadcast %cst_69 : f32 to vector<8x32xf32>
    %219 = arith.addf %218, %217 : vector<8x32xf32>
    %220 = arith.divf %218, %219 : vector<8x32xf32>
    %221 = vector.extract_strided_slice %214 {offsets = [0, 32], sizes = [8, 32], strides = [1, 1]} : vector<8x128xf32> to vector<8x32xf32>
    %222 = arith.negf %221 : vector<8x32xf32>
    %223 = math.exp %222 : vector<8x32xf32>
    %cst_70 = arith.constant 1.000000e+00 : f32
    %224 = vector.broadcast %cst_70 : f32 to vector<8x32xf32>
    %225 = arith.addf %224, %223 : vector<8x32xf32>
    %226 = arith.divf %224, %225 : vector<8x32xf32>
    %227 = vector.extract_strided_slice %214 {offsets = [0, 64], sizes = [8, 32], strides = [1, 1]} : vector<8x128xf32> to vector<8x32xf32>
    %228 = math.tanh %227 : vector<8x32xf32>
    %229 = vector.extract_strided_slice %214 {offsets = [0, 96], sizes = [8, 32], strides = [1, 1]} : vector<8x128xf32> to vector<8x32xf32>
    %230 = arith.negf %229 : vector<8x32xf32>
    %231 = math.exp %230 : vector<8x32xf32>
    %cst_71 = arith.constant 1.000000e+00 : f32
    %232 = vector.broadcast %cst_71 : f32 to vector<8x32xf32>
    %233 = arith.addf %232, %231 : vector<8x32xf32>
    %234 = arith.divf %232, %233 : vector<8x32xf32>
    %235 = arith.mulf %226, %205 : vector<8x32xf32>
    %236 = arith.mulf %220, %228 : vector<8x32xf32>
    %237 = arith.addf %235, %236 : vector<8x32xf32>
    %238 = math.tanh %237 : vector<8x32xf32>
    %239 = arith.mulf %234, %238 : vector<8x32xf32>
    %c8_i32_72 = arith.constant 8 : i32
    %240 = arith.muli %arg1, %c8_i32_72 : i32
    %241 = arith.addi %240, %c5_i32 : i32
    %c8_i32_73 = arith.constant 8 : i32
    %242 = arith.cmpi slt, %241, %c8_i32_73 : i32
    %243 = arith.select %242, %239, %204 : vector<8x32xf32>
    %244 = arith.select %242, %237, %205 : vector<8x32xf32>
    %245 = arith.index_cast %c5_i32 : i32 to index
    %c0_74 = arith.constant 0 : index
    %c0_75 = arith.constant 0 : index
    %246 = vector.load %arg6[%245, %c0_74, %c0_75] : memref<8x8x32xf32, #tpu.memory_space<vmem>>, vector<1x8x32xf32>
    %247 = vector.shape_cast %246 : vector<1x8x32xf32> to vector<8x32xf32>
    %248 = vector.shape_cast %243 : vector<8x32xf32> to vector<1x8x32xf32>
    tpu.vector_store %arg6[%245, %c0_74, %c0_75], %248 {strides = array<i32>} : memref<8x8x32xf32, #tpu.memory_space<vmem>>, vector<1x8x32xf32>,
    %c6_i32 = arith.constant 6 : i32
    %249 = arith.index_cast %c6_i32 : i32 to index
    %c0_76 = arith.constant 0 : index
    %c0_77 = arith.constant 0 : index
    %250 = vector.load %arg11[%249, %c0_76, %c0_77] : memref<8x8x128xf32, #tpu.memory_space<vmem>>, vector<1x8x128xf32>
    %251 = vector.shape_cast %250 : vector<1x8x128xf32> to vector<8x128xf32>
    %cst_78 = arith.constant dense<0.000000e+00> : vector<8x128xf32>
    %252 = tpu.matmul %243, %12, %cst_78 {dimension_numbers = #tpu.dot_dimension_numbers<[1], [0], [0], [1], [0, 0, 1, 1], [], []>} : vector<8x32xf32>, vector<32x128xf32>, vector<8x128xf32> -> vector<8x128xf32>
    %253 = arith.addf %251, %252 : vector<8x128xf32>
    %254 = vector.extract_strided_slice %253 {offsets = [0, 0], sizes = [8, 32], strides = [1, 1]} : vector<8x128xf32> to vector<8x32xf32>
    %255 = arith.negf %254 : vector<8x32xf32>
    %256 = math.exp %255 : vector<8x32xf32>
    %cst_79 = arith.constant 1.000000e+00 : f32
    %257 = vector.broadcast %cst_79 : f32 to vector<8x32xf32>
    %258 = arith.addf %257, %256 : vector<8x32xf32>
    %259 = arith.divf %257, %258 : vector<8x32xf32>
    %260 = vector.extract_strided_slice %253 {offsets = [0, 32], sizes = [8, 32], strides = [1, 1]} : vector<8x128xf32> to vector<8x32xf32>
    %261 = arith.negf %260 : vector<8x32xf32>
    %262 = math.exp %261 : vector<8x32xf32>
    %cst_80 = arith.constant 1.000000e+00 : f32
    %263 = vector.broadcast %cst_80 : f32 to vector<8x32xf32>
    %264 = arith.addf %263, %262 : vector<8x32xf32>
    %265 = arith.divf %263, %264 : vector<8x32xf32>
    %266 = vector.extract_strided_slice %253 {offsets = [0, 64], sizes = [8, 32], strides = [1, 1]} : vector<8x128xf32> to vector<8x32xf32>
    %267 = math.tanh %266 : vector<8x32xf32>
    %268 = vector.extract_strided_slice %253 {offsets = [0, 96], sizes = [8, 32], strides = [1, 1]} : vector<8x128xf32> to vector<8x32xf32>
    %269 = arith.negf %268 : vector<8x32xf32>
    %270 = math.exp %269 : vector<8x32xf32>
    %cst_81 = arith.constant 1.000000e+00 : f32
    %271 = vector.broadcast %cst_81 : f32 to vector<8x32xf32>
    %272 = arith.addf %271, %270 : vector<8x32xf32>
    %273 = arith.divf %271, %272 : vector<8x32xf32>
    %274 = arith.mulf %265, %244 : vector<8x32xf32>
    %275 = arith.mulf %259, %267 : vector<8x32xf32>
    %276 = arith.addf %274, %275 : vector<8x32xf32>
    %277 = math.tanh %276 : vector<8x32xf32>
    %278 = arith.mulf %273, %277 : vector<8x32xf32>
    %c8_i32_82 = arith.constant 8 : i32
    %279 = arith.muli %arg1, %c8_i32_82 : i32
    %280 = arith.addi %279, %c6_i32 : i32
    %c8_i32_83 = arith.constant 8 : i32
    %281 = arith.cmpi slt, %280, %c8_i32_83 : i32
    %282 = arith.select %281, %278, %243 : vector<8x32xf32>
    %283 = arith.select %281, %276, %244 : vector<8x32xf32>
    %284 = arith.index_cast %c6_i32 : i32 to index
    %c0_84 = arith.constant 0 : index
    %c0_85 = arith.constant 0 : index
    %285 = vector.load %arg6[%284, %c0_84, %c0_85] : memref<8x8x32xf32, #tpu.memory_space<vmem>>, vector<1x8x32xf32>
    %286 = vector.shape_cast %285 : vector<1x8x32xf32> to vector<8x32xf32>
    %287 = vector.shape_cast %282 : vector<8x32xf32> to vector<1x8x32xf32>
    tpu.vector_store %arg6[%284, %c0_84, %c0_85], %287 {strides = array<i32>} : memref<8x8x32xf32, #tpu.memory_space<vmem>>, vector<1x8x32xf32>,
    %c7_i32 = arith.constant 7 : i32
    %288 = arith.index_cast %c7_i32 : i32 to index
    %c0_86 = arith.constant 0 : index
    %c0_87 = arith.constant 0 : index
    %289 = vector.load %arg11[%288, %c0_86, %c0_87] : memref<8x8x128xf32, #tpu.memory_space<vmem>>, vector<1x8x128xf32>
    %290 = vector.shape_cast %289 : vector<1x8x128xf32> to vector<8x128xf32>
    %cst_88 = arith.constant dense<0.000000e+00> : vector<8x128xf32>
    %291 = tpu.matmul %282, %12, %cst_88 {dimension_numbers = #tpu.dot_dimension_numbers<[1], [0], [0], [1], [0, 0, 1, 1], [], []>} : vector<8x32xf32>, vector<32x128xf32>, vector<8x128xf32> -> vector<8x128xf32>
    %292 = arith.addf %290, %291 : vector<8x128xf32>
    %293 = vector.extract_strided_slice %292 {offsets = [0, 0], sizes = [8, 32], strides = [1, 1]} : vector<8x128xf32> to vector<8x32xf32>
    %294 = arith.negf %293 : vector<8x32xf32>
    %295 = math.exp %294 : vector<8x32xf32>
    %cst_89 = arith.constant 1.000000e+00 : f32
    %296 = vector.broadcast %cst_89 : f32 to vector<8x32xf32>
    %297 = arith.addf %296, %295 : vector<8x32xf32>
    %298 = arith.divf %296, %297 : vector<8x32xf32>
    %299 = vector.extract_strided_slice %292 {offsets = [0, 32], sizes = [8, 32], strides = [1, 1]} : vector<8x128xf32> to vector<8x32xf32>
    %300 = arith.negf %299 : vector<8x32xf32>
    %301 = math.exp %300 : vector<8x32xf32>
    %cst_90 = arith.constant 1.000000e+00 : f32
    %302 = vector.broadcast %cst_90 : f32 to vector<8x32xf32>
    %303 = arith.addf %302, %301 : vector<8x32xf32>
    %304 = arith.divf %302, %303 : vector<8x32xf32>
    %305 = vector.extract_strided_slice %292 {offsets = [0, 64], sizes = [8, 32], strides = [1, 1]} : vector<8x128xf32> to vector<8x32xf32>
    %306 = math.tanh %305 : vector<8x32xf32>
    %307 = vector.extract_strided_slice %292 {offsets = [0, 96], sizes = [8, 32], strides = [1, 1]} : vector<8x128xf32> to vector<8x32xf32>
    %308 = arith.negf %307 : vector<8x32xf32>
    %309 = math.exp %308 : vector<8x32xf32>
    %cst_91 = arith.constant 1.000000e+00 : f32
    %310 = vector.broadcast %cst_91 : f32 to vector<8x32xf32>
    %311 = arith.addf %310, %309 : vector<8x32xf32>
    %312 = arith.divf %310, %311 : vector<8x32xf32>
    %313 = arith.mulf %304, %283 : vector<8x32xf32>
    %314 = arith.mulf %298, %306 : vector<8x32xf32>
    %315 = arith.addf %313, %314 : vector<8x32xf32>
    %316 = math.tanh %315 : vector<8x32xf32>
    %317 = arith.mulf %312, %316 : vector<8x32xf32>
    %c8_i32_92 = arith.constant 8 : i32
    %318 = arith.muli %arg1, %c8_i32_92 : i32
    %319 = arith.addi %318, %c7_i32 : i32
    %c8_i32_93 = arith.constant 8 : i32
    %320 = arith.cmpi slt, %319, %c8_i32_93 : i32
    %321 = arith.select %320, %317, %282 : vector<8x32xf32>
    %322 = arith.select %320, %315, %283 : vector<8x32xf32>
    %323 = arith.index_cast %c7_i32 : i32 to index
    %c0_94 = arith.constant 0 : index
    %c0_95 = arith.constant 0 : index
    %324 = vector.load %arg6[%323, %c0_94, %c0_95] : memref<8x8x32xf32, #tpu.memory_space<vmem>>, vector<1x8x32xf32>
    %325 = vector.shape_cast %324 : vector<1x8x32xf32> to vector<8x32xf32>
    %326 = vector.shape_cast %321 : vector<8x32xf32> to vector<1x8x32xf32>
    tpu.vector_store %arg6[%323, %c0_94, %c0_95], %326 {strides = array<i32>} : memref<8x8x32xf32, #tpu.memory_space<vmem>>, vector<1x8x32xf32>,
    %c8_i32_96 = arith.constant 8 : i32
    %c0_97 = arith.constant 0 : index
    %c0_98 = arith.constant 0 : index
    %327 = vector.load %arg9[%c0_97, %c0_98] : memref<8x32xf32, #tpu.memory_space<vmem>>, vector<8x32xf32>
    tpu.vector_store %arg9[%c0_97, %c0_98], %321 {strides = array<i32>} : memref<8x32xf32, #tpu.memory_space<vmem>>, vector<8x32xf32>,
    %c0_99 = arith.constant 0 : index
    %c0_100 = arith.constant 0 : index
    %328 = vector.load %arg10[%c0_99, %c0_100] : memref<8x32xf32, #tpu.memory_space<vmem>>, vector<8x32xf32>
    tpu.vector_store %arg10[%c0_99, %c0_100], %322 {strides = array<i32>} : memref<8x32xf32, #tpu.memory_space<vmem>>, vector<8x32xf32>,
    %c0_101 = arith.constant 0 : index
    %c0_102 = arith.constant 0 : index
    %329 = vector.load %arg7[%c0_101, %c0_102] : memref<8x32xf32, #tpu.memory_space<vmem>>, vector<8x32xf32>
    tpu.vector_store %arg7[%c0_101, %c0_102], %321 {strides = array<i32>} : memref<8x32xf32, #tpu.memory_space<vmem>>, vector<8x32xf32>,
    %c0_103 = arith.constant 0 : index
    %c0_104 = arith.constant 0 : index
    %330 = vector.load %arg8[%c0_103, %c0_104] : memref<8x32xf32, #tpu.memory_space<vmem>>, vector<8x32xf32>
    tpu.vector_store %arg8[%c0_103, %c0_104], %322 {strides = array<i32>} : memref<8x32xf32, #tpu.memory_space<vmem>>, vector<8x32xf32>,
    return
  }
  func.func @transform_0(%arg0: i32, %arg1: i32) -> (i32, i32, i32) {
    %c0_i32 = arith.constant 0 : i32
    %c0_i32_0 = arith.constant 0 : i32
    return %arg1, %arg0, %c0_i32 : i32, i32, i32
  }
  func.func @transform_1(%arg0: i32, %arg1: i32) -> (i32, i32) {
    %c0_i32 = arith.constant 0 : i32
    %c0_i32_0 = arith.constant 0 : i32
    %c0_i32_1 = arith.constant 0 : i32
    return %c0_i32, %c0_i32_0 : i32, i32
  }
  func.func @transform_2(%arg0: i32, %arg1: i32) -> (i32, i32) {
    %c0_i32 = arith.constant 0 : i32
    %c0_i32_0 = arith.constant 0 : i32
    %c0_i32_1 = arith.constant 0 : i32
    return %c0_i32, %c0_i32_0 : i32, i32
  }
  func.func @transform_3(%arg0: i32, %arg1: i32) -> (i32, i32) {
    %c0_i32 = arith.constant 0 : i32
    %c0_i32_0 = arith.constant 0 : i32
    %c0_i32_1 = arith.constant 0 : i32
    return %c0_i32, %c0_i32_0 : i32, i32
  }
  func.func @transform_4(%arg0: i32, %arg1: i32) -> (i32, i32, i32) {
    %c0_i32 = arith.constant 0 : i32
    %c0_i32_0 = arith.constant 0 : i32
    return %arg1, %arg0, %c0_i32 : i32, i32, i32
  }
  func.func @transform_5(%arg0: i32, %arg1: i32) -> (i32, i32) {
    %c0_i32 = arith.constant 0 : i32
    %c0_i32_0 = arith.constant 0 : i32
    return %arg0, %c0_i32 : i32, i32
  }
  func.func @transform_6(%arg0: i32, %arg1: i32) -> (i32, i32) {
    %c0_i32 = arith.constant 0 : i32
    %c0_i32_0 = arith.constant 0 : i32
    return %arg0, %c0_i32 : i32, i32
  }
}

module attributes {stable_mosaic.version = 11 : i64} {
  func.func @_lstm_kernel(%arg0: i32, %arg1: i32, %arg2: memref<4x8x32xf32, #tpu.memory_space<vmem>>, %arg3: memref<32x128xf32, #tpu.memory_space<vmem>>, %arg4: memref<32x128xf32, #tpu.memory_space<vmem>>, %arg5: memref<1x128xf32, #tpu.memory_space<vmem>>, %arg6: memref<4x8x32xf32, #tpu.memory_space<vmem>>, %arg7: memref<8x32xf32, #tpu.memory_space<vmem>>, %arg8: memref<8x32xf32, #tpu.memory_space<vmem>>, %arg9: memref<8x32xf32, #tpu.memory_space<vmem>>, %arg10: memref<8x32xf32, #tpu.memory_space<vmem>>, %arg11: memref<4x8x128xf32, #tpu.memory_space<vmem>>) attributes {dimension_semantics = [#tpu.dimension_semantics<parallel>, #tpu.dimension_semantics<arbitrary>], iteration_bounds = array<i64: 1, 1>, scalar_prefetch = 0 : i64, scratch_operands = 3 : i64, tpu.core_type = #tpu.core_type<tc>, window_params = [{transform_indices = @transform_0, window_bounds = array<i64: 4, 8, 32>}, {pipeline_mode = #tpu.pipeline_mode<synchronous>, transform_indices = @transform_1, window_bounds = array<i64: 32, 128>}, {pipeline_mode = #tpu.pipeline_mode<synchronous>, transform_indices = @transform_2, window_bounds = array<i64: 32, 128>}, {pipeline_mode = #tpu.pipeline_mode<synchronous>, transform_indices = @transform_3, window_bounds = array<i64: 1, 128>}, {transform_indices = @transform_4, window_bounds = array<i64: 4, 8, 32>}, {transform_indices = @transform_5, window_bounds = array<i64: 8, 32>}, {transform_indices = @transform_6, window_bounds = array<i64: 8, 32>}]} {
    %c0_i32 = arith.constant 0 : i32
    %0 = arith.cmpi eq, %arg1, %c0_i32 : i32
    %1 = arith.extui %0 : i1 to i32
    %c0_i32_0 = arith.constant 0 : i32
    %2 = arith.cmpi ne, %1, %c0_i32_0 : i32
    scf.if %2 {
      %cst_65 = arith.constant 0.000000e+00 : f32
      %175 = vector.broadcast %cst_65 : f32 to vector<8x32xf32>
      %c0_66 = arith.constant 0 : index
      %c0_67 = arith.constant 0 : index
      %176 = vector.load %arg9[%c0_66, %c0_67] : memref<8x32xf32, #tpu.memory_space<vmem>>, vector<8x32xf32>
      tpu.vector_store %arg9[%c0_66, %c0_67], %175 {strides = array<i32>} : memref<8x32xf32, #tpu.memory_space<vmem>>, vector<8x32xf32>,
      %cst_68 = arith.constant 0.000000e+00 : f32
      %177 = vector.broadcast %cst_68 : f32 to vector<8x32xf32>
      %c0_69 = arith.constant 0 : index
      %c0_70 = arith.constant 0 : index
      %178 = vector.load %arg10[%c0_69, %c0_70] : memref<8x32xf32, #tpu.memory_space<vmem>>, vector<8x32xf32>
      tpu.vector_store %arg10[%c0_69, %c0_70], %177 {strides = array<i32>} : memref<8x32xf32, #tpu.memory_space<vmem>>, vector<8x32xf32>,
    } else {
    }
    %c0 = arith.constant 0 : index
    %c0_1 = arith.constant 0 : index
    %c0_2 = arith.constant 0 : index
    %3 = vector.load %arg2[%c0, %c0_1, %c0_2] : memref<4x8x32xf32, #tpu.memory_space<vmem>>, vector<4x8x32xf32>
    %4 = vector.shape_cast %3 : vector<4x8x32xf32> to vector<32x32xf32>
    %c0_3 = arith.constant 0 : index
    %c0_4 = arith.constant 0 : index
    %5 = vector.load %arg3[%c0_3, %c0_4] : memref<32x128xf32, #tpu.memory_space<vmem>>, vector<32x128xf32>
    %cst = arith.constant dense<0.000000e+00> : vector<32x128xf32>
    %6 = tpu.matmul %4, %5, %cst {dimension_numbers = #tpu.dot_dimension_numbers<[1], [0], [0], [1], [0, 0, 1, 1], [], []>} : vector<32x32xf32>, vector<32x128xf32>, vector<32x128xf32> -> vector<32x128xf32>
    %c0_5 = arith.constant 0 : index
    %c0_6 = arith.constant 0 : index
    %7 = vector.load %arg5[%c0_5, %c0_6] : memref<1x128xf32, #tpu.memory_space<vmem>>, vector<1x128xf32>
    %8 = vector.broadcast %7 : vector<1x128xf32> to vector<32x128xf32>
    %9 = arith.addf %6, %8 : vector<32x128xf32>
    %10 = vector.shape_cast %9 : vector<32x128xf32> to vector<4x8x128xf32>
    %c0_7 = arith.constant 0 : index
    %c0_8 = arith.constant 0 : index
    %c0_9 = arith.constant 0 : index
    %11 = vector.load %arg11[%c0_7, %c0_8, %c0_9] : memref<4x8x128xf32, #tpu.memory_space<vmem>>, vector<4x8x128xf32>
    tpu.vector_store %arg11[%c0_7, %c0_8, %c0_9], %10 {strides = array<i32>} : memref<4x8x128xf32, #tpu.memory_space<vmem>>, vector<4x8x128xf32>,
    %c0_10 = arith.constant 0 : index
    %c0_11 = arith.constant 0 : index
    %12 = vector.load %arg4[%c0_10, %c0_11] : memref<32x128xf32, #tpu.memory_space<vmem>>, vector<32x128xf32>
    %c0_12 = arith.constant 0 : index
    %c0_13 = arith.constant 0 : index
    %13 = vector.load %arg9[%c0_12, %c0_13] : memref<8x32xf32, #tpu.memory_space<vmem>>, vector<8x32xf32>
    %c0_14 = arith.constant 0 : index
    %c0_15 = arith.constant 0 : index
    %14 = vector.load %arg10[%c0_14, %c0_15] : memref<8x32xf32, #tpu.memory_space<vmem>>, vector<8x32xf32>
    %c0_i32_16 = arith.constant 0 : i32
    %15 = arith.index_cast %c0_i32_16 : i32 to index
    %c0_17 = arith.constant 0 : index
    %c0_18 = arith.constant 0 : index
    %16 = vector.load %arg11[%15, %c0_17, %c0_18] : memref<4x8x128xf32, #tpu.memory_space<vmem>>, vector<1x8x128xf32>
    %17 = vector.shape_cast %16 : vector<1x8x128xf32> to vector<8x128xf32>
    %cst_19 = arith.constant dense<0.000000e+00> : vector<8x128xf32>
    %18 = tpu.matmul %13, %12, %cst_19 {dimension_numbers = #tpu.dot_dimension_numbers<[1], [0], [0], [1], [0, 0, 1, 1], [], []>} : vector<8x32xf32>, vector<32x128xf32>, vector<8x128xf32> -> vector<8x128xf32>
    %19 = arith.addf %17, %18 : vector<8x128xf32>
    %20 = vector.extract_strided_slice %19 {offsets = [0, 0], sizes = [8, 32], strides = [1, 1]} : vector<8x128xf32> to vector<8x32xf32>
    %21 = arith.negf %20 : vector<8x32xf32>
    %22 = math.exp %21 : vector<8x32xf32>
    %cst_20 = arith.constant 1.000000e+00 : f32
    %23 = vector.broadcast %cst_20 : f32 to vector<8x32xf32>
    %24 = arith.addf %23, %22 : vector<8x32xf32>
    %25 = arith.divf %23, %24 : vector<8x32xf32>
    %26 = vector.extract_strided_slice %19 {offsets = [0, 32], sizes = [8, 32], strides = [1, 1]} : vector<8x128xf32> to vector<8x32xf32>
    %27 = arith.negf %26 : vector<8x32xf32>
    %28 = math.exp %27 : vector<8x32xf32>
    %cst_21 = arith.constant 1.000000e+00 : f32
    %29 = vector.broadcast %cst_21 : f32 to vector<8x32xf32>
    %30 = arith.addf %29, %28 : vector<8x32xf32>
    %31 = arith.divf %29, %30 : vector<8x32xf32>
    %32 = vector.extract_strided_slice %19 {offsets = [0, 64], sizes = [8, 32], strides = [1, 1]} : vector<8x128xf32> to vector<8x32xf32>
    %33 = math.tanh %32 : vector<8x32xf32>
    %34 = vector.extract_strided_slice %19 {offsets = [0, 96], sizes = [8, 32], strides = [1, 1]} : vector<8x128xf32> to vector<8x32xf32>
    %35 = arith.negf %34 : vector<8x32xf32>
    %36 = math.exp %35 : vector<8x32xf32>
    %cst_22 = arith.constant 1.000000e+00 : f32
    %37 = vector.broadcast %cst_22 : f32 to vector<8x32xf32>
    %38 = arith.addf %37, %36 : vector<8x32xf32>
    %39 = arith.divf %37, %38 : vector<8x32xf32>
    %40 = arith.mulf %31, %14 : vector<8x32xf32>
    %41 = arith.mulf %25, %33 : vector<8x32xf32>
    %42 = arith.addf %40, %41 : vector<8x32xf32>
    %43 = math.tanh %42 : vector<8x32xf32>
    %44 = arith.mulf %39, %43 : vector<8x32xf32>
    %c4_i32 = arith.constant 4 : i32
    %45 = arith.muli %arg1, %c4_i32 : i32
    %46 = arith.addi %45, %c0_i32_16 : i32
    %c4_i32_23 = arith.constant 4 : i32
    %47 = arith.cmpi slt, %46, %c4_i32_23 : i32
    %48 = arith.select %47, %44, %13 : vector<8x32xf32>
    %49 = arith.select %47, %42, %14 : vector<8x32xf32>
    %50 = arith.index_cast %c0_i32_16 : i32 to index
    %c0_24 = arith.constant 0 : index
    %c0_25 = arith.constant 0 : index
    %51 = vector.load %arg6[%50, %c0_24, %c0_25] : memref<4x8x32xf32, #tpu.memory_space<vmem>>, vector<1x8x32xf32>
    %52 = vector.shape_cast %51 : vector<1x8x32xf32> to vector<8x32xf32>
    %53 = vector.shape_cast %48 : vector<8x32xf32> to vector<1x8x32xf32>
    tpu.vector_store %arg6[%50, %c0_24, %c0_25], %53 {strides = array<i32>} : memref<4x8x32xf32, #tpu.memory_space<vmem>>, vector<1x8x32xf32>,
    %c1_i32 = arith.constant 1 : i32
    %54 = arith.index_cast %c1_i32 : i32 to index
    %c0_26 = arith.constant 0 : index
    %c0_27 = arith.constant 0 : index
    %55 = vector.load %arg11[%54, %c0_26, %c0_27] : memref<4x8x128xf32, #tpu.memory_space<vmem>>, vector<1x8x128xf32>
    %56 = vector.shape_cast %55 : vector<1x8x128xf32> to vector<8x128xf32>
    %cst_28 = arith.constant dense<0.000000e+00> : vector<8x128xf32>
    %57 = tpu.matmul %48, %12, %cst_28 {dimension_numbers = #tpu.dot_dimension_numbers<[1], [0], [0], [1], [0, 0, 1, 1], [], []>} : vector<8x32xf32>, vector<32x128xf32>, vector<8x128xf32> -> vector<8x128xf32>
    %58 = arith.addf %56, %57 : vector<8x128xf32>
    %59 = vector.extract_strided_slice %58 {offsets = [0, 0], sizes = [8, 32], strides = [1, 1]} : vector<8x128xf32> to vector<8x32xf32>
    %60 = arith.negf %59 : vector<8x32xf32>
    %61 = math.exp %60 : vector<8x32xf32>
    %cst_29 = arith.constant 1.000000e+00 : f32
    %62 = vector.broadcast %cst_29 : f32 to vector<8x32xf32>
    %63 = arith.addf %62, %61 : vector<8x32xf32>
    %64 = arith.divf %62, %63 : vector<8x32xf32>
    %65 = vector.extract_strided_slice %58 {offsets = [0, 32], sizes = [8, 32], strides = [1, 1]} : vector<8x128xf32> to vector<8x32xf32>
    %66 = arith.negf %65 : vector<8x32xf32>
    %67 = math.exp %66 : vector<8x32xf32>
    %cst_30 = arith.constant 1.000000e+00 : f32
    %68 = vector.broadcast %cst_30 : f32 to vector<8x32xf32>
    %69 = arith.addf %68, %67 : vector<8x32xf32>
    %70 = arith.divf %68, %69 : vector<8x32xf32>
    %71 = vector.extract_strided_slice %58 {offsets = [0, 64], sizes = [8, 32], strides = [1, 1]} : vector<8x128xf32> to vector<8x32xf32>
    %72 = math.tanh %71 : vector<8x32xf32>
    %73 = vector.extract_strided_slice %58 {offsets = [0, 96], sizes = [8, 32], strides = [1, 1]} : vector<8x128xf32> to vector<8x32xf32>
    %74 = arith.negf %73 : vector<8x32xf32>
    %75 = math.exp %74 : vector<8x32xf32>
    %cst_31 = arith.constant 1.000000e+00 : f32
    %76 = vector.broadcast %cst_31 : f32 to vector<8x32xf32>
    %77 = arith.addf %76, %75 : vector<8x32xf32>
    %78 = arith.divf %76, %77 : vector<8x32xf32>
    %79 = arith.mulf %70, %49 : vector<8x32xf32>
    %80 = arith.mulf %64, %72 : vector<8x32xf32>
    %81 = arith.addf %79, %80 : vector<8x32xf32>
    %82 = math.tanh %81 : vector<8x32xf32>
    %83 = arith.mulf %78, %82 : vector<8x32xf32>
    %c4_i32_32 = arith.constant 4 : i32
    %84 = arith.muli %arg1, %c4_i32_32 : i32
    %85 = arith.addi %84, %c1_i32 : i32
    %c4_i32_33 = arith.constant 4 : i32
    %86 = arith.cmpi slt, %85, %c4_i32_33 : i32
    %87 = arith.select %86, %83, %48 : vector<8x32xf32>
    %88 = arith.select %86, %81, %49 : vector<8x32xf32>
    %89 = arith.index_cast %c1_i32 : i32 to index
    %c0_34 = arith.constant 0 : index
    %c0_35 = arith.constant 0 : index
    %90 = vector.load %arg6[%89, %c0_34, %c0_35] : memref<4x8x32xf32, #tpu.memory_space<vmem>>, vector<1x8x32xf32>
    %91 = vector.shape_cast %90 : vector<1x8x32xf32> to vector<8x32xf32>
    %92 = vector.shape_cast %87 : vector<8x32xf32> to vector<1x8x32xf32>
    tpu.vector_store %arg6[%89, %c0_34, %c0_35], %92 {strides = array<i32>} : memref<4x8x32xf32, #tpu.memory_space<vmem>>, vector<1x8x32xf32>,
    %c2_i32 = arith.constant 2 : i32
    %93 = arith.index_cast %c2_i32 : i32 to index
    %c0_36 = arith.constant 0 : index
    %c0_37 = arith.constant 0 : index
    %94 = vector.load %arg11[%93, %c0_36, %c0_37] : memref<4x8x128xf32, #tpu.memory_space<vmem>>, vector<1x8x128xf32>
    %95 = vector.shape_cast %94 : vector<1x8x128xf32> to vector<8x128xf32>
    %cst_38 = arith.constant dense<0.000000e+00> : vector<8x128xf32>
    %96 = tpu.matmul %87, %12, %cst_38 {dimension_numbers = #tpu.dot_dimension_numbers<[1], [0], [0], [1], [0, 0, 1, 1], [], []>} : vector<8x32xf32>, vector<32x128xf32>, vector<8x128xf32> -> vector<8x128xf32>
    %97 = arith.addf %95, %96 : vector<8x128xf32>
    %98 = vector.extract_strided_slice %97 {offsets = [0, 0], sizes = [8, 32], strides = [1, 1]} : vector<8x128xf32> to vector<8x32xf32>
    %99 = arith.negf %98 : vector<8x32xf32>
    %100 = math.exp %99 : vector<8x32xf32>
    %cst_39 = arith.constant 1.000000e+00 : f32
    %101 = vector.broadcast %cst_39 : f32 to vector<8x32xf32>
    %102 = arith.addf %101, %100 : vector<8x32xf32>
    %103 = arith.divf %101, %102 : vector<8x32xf32>
    %104 = vector.extract_strided_slice %97 {offsets = [0, 32], sizes = [8, 32], strides = [1, 1]} : vector<8x128xf32> to vector<8x32xf32>
    %105 = arith.negf %104 : vector<8x32xf32>
    %106 = math.exp %105 : vector<8x32xf32>
    %cst_40 = arith.constant 1.000000e+00 : f32
    %107 = vector.broadcast %cst_40 : f32 to vector<8x32xf32>
    %108 = arith.addf %107, %106 : vector<8x32xf32>
    %109 = arith.divf %107, %108 : vector<8x32xf32>
    %110 = vector.extract_strided_slice %97 {offsets = [0, 64], sizes = [8, 32], strides = [1, 1]} : vector<8x128xf32> to vector<8x32xf32>
    %111 = math.tanh %110 : vector<8x32xf32>
    %112 = vector.extract_strided_slice %97 {offsets = [0, 96], sizes = [8, 32], strides = [1, 1]} : vector<8x128xf32> to vector<8x32xf32>
    %113 = arith.negf %112 : vector<8x32xf32>
    %114 = math.exp %113 : vector<8x32xf32>
    %cst_41 = arith.constant 1.000000e+00 : f32
    %115 = vector.broadcast %cst_41 : f32 to vector<8x32xf32>
    %116 = arith.addf %115, %114 : vector<8x32xf32>
    %117 = arith.divf %115, %116 : vector<8x32xf32>
    %118 = arith.mulf %109, %88 : vector<8x32xf32>
    %119 = arith.mulf %103, %111 : vector<8x32xf32>
    %120 = arith.addf %118, %119 : vector<8x32xf32>
    %121 = math.tanh %120 : vector<8x32xf32>
    %122 = arith.mulf %117, %121 : vector<8x32xf32>
    %c4_i32_42 = arith.constant 4 : i32
    %123 = arith.muli %arg1, %c4_i32_42 : i32
    %124 = arith.addi %123, %c2_i32 : i32
    %c4_i32_43 = arith.constant 4 : i32
    %125 = arith.cmpi slt, %124, %c4_i32_43 : i32
    %126 = arith.select %125, %122, %87 : vector<8x32xf32>
    %127 = arith.select %125, %120, %88 : vector<8x32xf32>
    %128 = arith.index_cast %c2_i32 : i32 to index
    %c0_44 = arith.constant 0 : index
    %c0_45 = arith.constant 0 : index
    %129 = vector.load %arg6[%128, %c0_44, %c0_45] : memref<4x8x32xf32, #tpu.memory_space<vmem>>, vector<1x8x32xf32>
    %130 = vector.shape_cast %129 : vector<1x8x32xf32> to vector<8x32xf32>
    %131 = vector.shape_cast %126 : vector<8x32xf32> to vector<1x8x32xf32>
    tpu.vector_store %arg6[%128, %c0_44, %c0_45], %131 {strides = array<i32>} : memref<4x8x32xf32, #tpu.memory_space<vmem>>, vector<1x8x32xf32>,
    %c3_i32 = arith.constant 3 : i32
    %132 = arith.index_cast %c3_i32 : i32 to index
    %c0_46 = arith.constant 0 : index
    %c0_47 = arith.constant 0 : index
    %133 = vector.load %arg11[%132, %c0_46, %c0_47] : memref<4x8x128xf32, #tpu.memory_space<vmem>>, vector<1x8x128xf32>
    %134 = vector.shape_cast %133 : vector<1x8x128xf32> to vector<8x128xf32>
    %cst_48 = arith.constant dense<0.000000e+00> : vector<8x128xf32>
    %135 = tpu.matmul %126, %12, %cst_48 {dimension_numbers = #tpu.dot_dimension_numbers<[1], [0], [0], [1], [0, 0, 1, 1], [], []>} : vector<8x32xf32>, vector<32x128xf32>, vector<8x128xf32> -> vector<8x128xf32>
    %136 = arith.addf %134, %135 : vector<8x128xf32>
    %137 = vector.extract_strided_slice %136 {offsets = [0, 0], sizes = [8, 32], strides = [1, 1]} : vector<8x128xf32> to vector<8x32xf32>
    %138 = arith.negf %137 : vector<8x32xf32>
    %139 = math.exp %138 : vector<8x32xf32>
    %cst_49 = arith.constant 1.000000e+00 : f32
    %140 = vector.broadcast %cst_49 : f32 to vector<8x32xf32>
    %141 = arith.addf %140, %139 : vector<8x32xf32>
    %142 = arith.divf %140, %141 : vector<8x32xf32>
    %143 = vector.extract_strided_slice %136 {offsets = [0, 32], sizes = [8, 32], strides = [1, 1]} : vector<8x128xf32> to vector<8x32xf32>
    %144 = arith.negf %143 : vector<8x32xf32>
    %145 = math.exp %144 : vector<8x32xf32>
    %cst_50 = arith.constant 1.000000e+00 : f32
    %146 = vector.broadcast %cst_50 : f32 to vector<8x32xf32>
    %147 = arith.addf %146, %145 : vector<8x32xf32>
    %148 = arith.divf %146, %147 : vector<8x32xf32>
    %149 = vector.extract_strided_slice %136 {offsets = [0, 64], sizes = [8, 32], strides = [1, 1]} : vector<8x128xf32> to vector<8x32xf32>
    %150 = math.tanh %149 : vector<8x32xf32>
    %151 = vector.extract_strided_slice %136 {offsets = [0, 96], sizes = [8, 32], strides = [1, 1]} : vector<8x128xf32> to vector<8x32xf32>
    %152 = arith.negf %151 : vector<8x32xf32>
    %153 = math.exp %152 : vector<8x32xf32>
    %cst_51 = arith.constant 1.000000e+00 : f32
    %154 = vector.broadcast %cst_51 : f32 to vector<8x32xf32>
    %155 = arith.addf %154, %153 : vector<8x32xf32>
    %156 = arith.divf %154, %155 : vector<8x32xf32>
    %157 = arith.mulf %148, %127 : vector<8x32xf32>
    %158 = arith.mulf %142, %150 : vector<8x32xf32>
    %159 = arith.addf %157, %158 : vector<8x32xf32>
    %160 = math.tanh %159 : vector<8x32xf32>
    %161 = arith.mulf %156, %160 : vector<8x32xf32>
    %c4_i32_52 = arith.constant 4 : i32
    %162 = arith.muli %arg1, %c4_i32_52 : i32
    %163 = arith.addi %162, %c3_i32 : i32
    %c4_i32_53 = arith.constant 4 : i32
    %164 = arith.cmpi slt, %163, %c4_i32_53 : i32
    %165 = arith.select %164, %161, %126 : vector<8x32xf32>
    %166 = arith.select %164, %159, %127 : vector<8x32xf32>
    %167 = arith.index_cast %c3_i32 : i32 to index
    %c0_54 = arith.constant 0 : index
    %c0_55 = arith.constant 0 : index
    %168 = vector.load %arg6[%167, %c0_54, %c0_55] : memref<4x8x32xf32, #tpu.memory_space<vmem>>, vector<1x8x32xf32>
    %169 = vector.shape_cast %168 : vector<1x8x32xf32> to vector<8x32xf32>
    %170 = vector.shape_cast %165 : vector<8x32xf32> to vector<1x8x32xf32>
    tpu.vector_store %arg6[%167, %c0_54, %c0_55], %170 {strides = array<i32>} : memref<4x8x32xf32, #tpu.memory_space<vmem>>, vector<1x8x32xf32>,
    %c4_i32_56 = arith.constant 4 : i32
    %c0_57 = arith.constant 0 : index
    %c0_58 = arith.constant 0 : index
    %171 = vector.load %arg9[%c0_57, %c0_58] : memref<8x32xf32, #tpu.memory_space<vmem>>, vector<8x32xf32>
    tpu.vector_store %arg9[%c0_57, %c0_58], %165 {strides = array<i32>} : memref<8x32xf32, #tpu.memory_space<vmem>>, vector<8x32xf32>,
    %c0_59 = arith.constant 0 : index
    %c0_60 = arith.constant 0 : index
    %172 = vector.load %arg10[%c0_59, %c0_60] : memref<8x32xf32, #tpu.memory_space<vmem>>, vector<8x32xf32>
    tpu.vector_store %arg10[%c0_59, %c0_60], %166 {strides = array<i32>} : memref<8x32xf32, #tpu.memory_space<vmem>>, vector<8x32xf32>,
    %c0_61 = arith.constant 0 : index
    %c0_62 = arith.constant 0 : index
    %173 = vector.load %arg7[%c0_61, %c0_62] : memref<8x32xf32, #tpu.memory_space<vmem>>, vector<8x32xf32>
    tpu.vector_store %arg7[%c0_61, %c0_62], %165 {strides = array<i32>} : memref<8x32xf32, #tpu.memory_space<vmem>>, vector<8x32xf32>,
    %c0_63 = arith.constant 0 : index
    %c0_64 = arith.constant 0 : index
    %174 = vector.load %arg8[%c0_63, %c0_64] : memref<8x32xf32, #tpu.memory_space<vmem>>, vector<8x32xf32>
    tpu.vector_store %arg8[%c0_63, %c0_64], %166 {strides = array<i32>} : memref<8x32xf32, #tpu.memory_space<vmem>>, vector<8x32xf32>,
    return
  }
  func.func @transform_0(%arg0: i32, %arg1: i32) -> (i32, i32, i32) {
    %c0_i32 = arith.constant 0 : i32
    %c0_i32_0 = arith.constant 0 : i32
    return %arg1, %arg0, %c0_i32 : i32, i32, i32
  }
  func.func @transform_1(%arg0: i32, %arg1: i32) -> (i32, i32) {
    %c0_i32 = arith.constant 0 : i32
    %c0_i32_0 = arith.constant 0 : i32
    %c0_i32_1 = arith.constant 0 : i32
    return %c0_i32, %c0_i32_0 : i32, i32
  }
  func.func @transform_2(%arg0: i32, %arg1: i32) -> (i32, i32) {
    %c0_i32 = arith.constant 0 : i32
    %c0_i32_0 = arith.constant 0 : i32
    %c0_i32_1 = arith.constant 0 : i32
    return %c0_i32, %c0_i32_0 : i32, i32
  }
  func.func @transform_3(%arg0: i32, %arg1: i32) -> (i32, i32) {
    %c0_i32 = arith.constant 0 : i32
    %c0_i32_0 = arith.constant 0 : i32
    %c0_i32_1 = arith.constant 0 : i32
    return %c0_i32, %c0_i32_0 : i32, i32
  }
  func.func @transform_4(%arg0: i32, %arg1: i32) -> (i32, i32, i32) {
    %c0_i32 = arith.constant 0 : i32
    %c0_i32_0 = arith.constant 0 : i32
    return %arg1, %arg0, %c0_i32 : i32, i32, i32
  }
  func.func @transform_5(%arg0: i32, %arg1: i32) -> (i32, i32) {
    %c0_i32 = arith.constant 0 : i32
    %c0_i32_0 = arith.constant 0 : i32
    return %arg0, %c0_i32 : i32, i32
  }
  func.func @transform_6(%arg0: i32, %arg1: i32) -> (i32, i32) {
    %c0_i32 = arith.constant 0 : i32
    %c0_i32_0 = arith.constant 0 : i32
    return %arg0, %c0_i32 : i32, i32
  }
}

module attributes {stable_mosaic.version = 11 : i64} {
  func.func @_lstm_kernel(%arg0: i32, %arg1: i32, %arg2: memref<2x8x32xf32, #tpu.memory_space<vmem>>, %arg3: memref<32x128xf32, #tpu.memory_space<vmem>>, %arg4: memref<32x128xf32, #tpu.memory_space<vmem>>, %arg5: memref<1x128xf32, #tpu.memory_space<vmem>>, %arg6: memref<2x8x32xf32, #tpu.memory_space<vmem>>, %arg7: memref<8x32xf32, #tpu.memory_space<vmem>>, %arg8: memref<8x32xf32, #tpu.memory_space<vmem>>, %arg9: memref<8x32xf32, #tpu.memory_space<vmem>>, %arg10: memref<8x32xf32, #tpu.memory_space<vmem>>, %arg11: memref<2x8x128xf32, #tpu.memory_space<vmem>>) attributes {dimension_semantics = [#tpu.dimension_semantics<parallel>, #tpu.dimension_semantics<arbitrary>], iteration_bounds = array<i64: 1, 1>, scalar_prefetch = 0 : i64, scratch_operands = 3 : i64, tpu.core_type = #tpu.core_type<tc>, window_params = [{transform_indices = @transform_0, window_bounds = array<i64: 2, 8, 32>}, {pipeline_mode = #tpu.pipeline_mode<synchronous>, transform_indices = @transform_1, window_bounds = array<i64: 32, 128>}, {pipeline_mode = #tpu.pipeline_mode<synchronous>, transform_indices = @transform_2, window_bounds = array<i64: 32, 128>}, {pipeline_mode = #tpu.pipeline_mode<synchronous>, transform_indices = @transform_3, window_bounds = array<i64: 1, 128>}, {transform_indices = @transform_4, window_bounds = array<i64: 2, 8, 32>}, {transform_indices = @transform_5, window_bounds = array<i64: 8, 32>}, {transform_indices = @transform_6, window_bounds = array<i64: 8, 32>}]} {
    %c0_i32 = arith.constant 0 : i32
    %0 = arith.cmpi eq, %arg1, %c0_i32 : i32
    %1 = arith.extui %0 : i1 to i32
    %c0_i32_0 = arith.constant 0 : i32
    %2 = arith.cmpi ne, %1, %c0_i32_0 : i32
    scf.if %2 {
      %cst_45 = arith.constant 0.000000e+00 : f32
      %97 = vector.broadcast %cst_45 : f32 to vector<8x32xf32>
      %c0_46 = arith.constant 0 : index
      %c0_47 = arith.constant 0 : index
      %98 = vector.load %arg9[%c0_46, %c0_47] : memref<8x32xf32, #tpu.memory_space<vmem>>, vector<8x32xf32>
      tpu.vector_store %arg9[%c0_46, %c0_47], %97 {strides = array<i32>} : memref<8x32xf32, #tpu.memory_space<vmem>>, vector<8x32xf32>,
      %cst_48 = arith.constant 0.000000e+00 : f32
      %99 = vector.broadcast %cst_48 : f32 to vector<8x32xf32>
      %c0_49 = arith.constant 0 : index
      %c0_50 = arith.constant 0 : index
      %100 = vector.load %arg10[%c0_49, %c0_50] : memref<8x32xf32, #tpu.memory_space<vmem>>, vector<8x32xf32>
      tpu.vector_store %arg10[%c0_49, %c0_50], %99 {strides = array<i32>} : memref<8x32xf32, #tpu.memory_space<vmem>>, vector<8x32xf32>,
    } else {
    }
    %c0 = arith.constant 0 : index
    %c0_1 = arith.constant 0 : index
    %c0_2 = arith.constant 0 : index
    %3 = vector.load %arg2[%c0, %c0_1, %c0_2] : memref<2x8x32xf32, #tpu.memory_space<vmem>>, vector<2x8x32xf32>
    %4 = vector.shape_cast %3 : vector<2x8x32xf32> to vector<16x32xf32>
    %c0_3 = arith.constant 0 : index
    %c0_4 = arith.constant 0 : index
    %5 = vector.load %arg3[%c0_3, %c0_4] : memref<32x128xf32, #tpu.memory_space<vmem>>, vector<32x128xf32>
    %cst = arith.constant dense<0.000000e+00> : vector<16x128xf32>
    %6 = tpu.matmul %4, %5, %cst {dimension_numbers = #tpu.dot_dimension_numbers<[1], [0], [0], [1], [0, 0, 1, 1], [], []>} : vector<16x32xf32>, vector<32x128xf32>, vector<16x128xf32> -> vector<16x128xf32>
    %c0_5 = arith.constant 0 : index
    %c0_6 = arith.constant 0 : index
    %7 = vector.load %arg5[%c0_5, %c0_6] : memref<1x128xf32, #tpu.memory_space<vmem>>, vector<1x128xf32>
    %8 = vector.broadcast %7 : vector<1x128xf32> to vector<16x128xf32>
    %9 = arith.addf %6, %8 : vector<16x128xf32>
    %10 = vector.shape_cast %9 : vector<16x128xf32> to vector<2x8x128xf32>
    %c0_7 = arith.constant 0 : index
    %c0_8 = arith.constant 0 : index
    %c0_9 = arith.constant 0 : index
    %11 = vector.load %arg11[%c0_7, %c0_8, %c0_9] : memref<2x8x128xf32, #tpu.memory_space<vmem>>, vector<2x8x128xf32>
    tpu.vector_store %arg11[%c0_7, %c0_8, %c0_9], %10 {strides = array<i32>} : memref<2x8x128xf32, #tpu.memory_space<vmem>>, vector<2x8x128xf32>,
    %c0_10 = arith.constant 0 : index
    %c0_11 = arith.constant 0 : index
    %12 = vector.load %arg4[%c0_10, %c0_11] : memref<32x128xf32, #tpu.memory_space<vmem>>, vector<32x128xf32>
    %c0_12 = arith.constant 0 : index
    %c0_13 = arith.constant 0 : index
    %13 = vector.load %arg9[%c0_12, %c0_13] : memref<8x32xf32, #tpu.memory_space<vmem>>, vector<8x32xf32>
    %c0_14 = arith.constant 0 : index
    %c0_15 = arith.constant 0 : index
    %14 = vector.load %arg10[%c0_14, %c0_15] : memref<8x32xf32, #tpu.memory_space<vmem>>, vector<8x32xf32>
    %c0_i32_16 = arith.constant 0 : i32
    %15 = arith.index_cast %c0_i32_16 : i32 to index
    %c0_17 = arith.constant 0 : index
    %c0_18 = arith.constant 0 : index
    %16 = vector.load %arg11[%15, %c0_17, %c0_18] : memref<2x8x128xf32, #tpu.memory_space<vmem>>, vector<1x8x128xf32>
    %17 = vector.shape_cast %16 : vector<1x8x128xf32> to vector<8x128xf32>
    %cst_19 = arith.constant dense<0.000000e+00> : vector<8x128xf32>
    %18 = tpu.matmul %13, %12, %cst_19 {dimension_numbers = #tpu.dot_dimension_numbers<[1], [0], [0], [1], [0, 0, 1, 1], [], []>} : vector<8x32xf32>, vector<32x128xf32>, vector<8x128xf32> -> vector<8x128xf32>
    %19 = arith.addf %17, %18 : vector<8x128xf32>
    %20 = vector.extract_strided_slice %19 {offsets = [0, 0], sizes = [8, 32], strides = [1, 1]} : vector<8x128xf32> to vector<8x32xf32>
    %21 = arith.negf %20 : vector<8x32xf32>
    %22 = math.exp %21 : vector<8x32xf32>
    %cst_20 = arith.constant 1.000000e+00 : f32
    %23 = vector.broadcast %cst_20 : f32 to vector<8x32xf32>
    %24 = arith.addf %23, %22 : vector<8x32xf32>
    %25 = arith.divf %23, %24 : vector<8x32xf32>
    %26 = vector.extract_strided_slice %19 {offsets = [0, 32], sizes = [8, 32], strides = [1, 1]} : vector<8x128xf32> to vector<8x32xf32>
    %27 = arith.negf %26 : vector<8x32xf32>
    %28 = math.exp %27 : vector<8x32xf32>
    %cst_21 = arith.constant 1.000000e+00 : f32
    %29 = vector.broadcast %cst_21 : f32 to vector<8x32xf32>
    %30 = arith.addf %29, %28 : vector<8x32xf32>
    %31 = arith.divf %29, %30 : vector<8x32xf32>
    %32 = vector.extract_strided_slice %19 {offsets = [0, 64], sizes = [8, 32], strides = [1, 1]} : vector<8x128xf32> to vector<8x32xf32>
    %33 = math.tanh %32 : vector<8x32xf32>
    %34 = vector.extract_strided_slice %19 {offsets = [0, 96], sizes = [8, 32], strides = [1, 1]} : vector<8x128xf32> to vector<8x32xf32>
    %35 = arith.negf %34 : vector<8x32xf32>
    %36 = math.exp %35 : vector<8x32xf32>
    %cst_22 = arith.constant 1.000000e+00 : f32
    %37 = vector.broadcast %cst_22 : f32 to vector<8x32xf32>
    %38 = arith.addf %37, %36 : vector<8x32xf32>
    %39 = arith.divf %37, %38 : vector<8x32xf32>
    %40 = arith.mulf %31, %14 : vector<8x32xf32>
    %41 = arith.mulf %25, %33 : vector<8x32xf32>
    %42 = arith.addf %40, %41 : vector<8x32xf32>
    %43 = math.tanh %42 : vector<8x32xf32>
    %44 = arith.mulf %39, %43 : vector<8x32xf32>
    %c2_i32 = arith.constant 2 : i32
    %45 = arith.muli %arg1, %c2_i32 : i32
    %46 = arith.addi %45, %c0_i32_16 : i32
    %c2_i32_23 = arith.constant 2 : i32
    %47 = arith.cmpi slt, %46, %c2_i32_23 : i32
    %48 = arith.select %47, %44, %13 : vector<8x32xf32>
    %49 = arith.select %47, %42, %14 : vector<8x32xf32>
    %50 = arith.index_cast %c0_i32_16 : i32 to index
    %c0_24 = arith.constant 0 : index
    %c0_25 = arith.constant 0 : index
    %51 = vector.load %arg6[%50, %c0_24, %c0_25] : memref<2x8x32xf32, #tpu.memory_space<vmem>>, vector<1x8x32xf32>
    %52 = vector.shape_cast %51 : vector<1x8x32xf32> to vector<8x32xf32>
    %53 = vector.shape_cast %48 : vector<8x32xf32> to vector<1x8x32xf32>
    tpu.vector_store %arg6[%50, %c0_24, %c0_25], %53 {strides = array<i32>} : memref<2x8x32xf32, #tpu.memory_space<vmem>>, vector<1x8x32xf32>,
    %c1_i32 = arith.constant 1 : i32
    %54 = arith.index_cast %c1_i32 : i32 to index
    %c0_26 = arith.constant 0 : index
    %c0_27 = arith.constant 0 : index
    %55 = vector.load %arg11[%54, %c0_26, %c0_27] : memref<2x8x128xf32, #tpu.memory_space<vmem>>, vector<1x8x128xf32>
    %56 = vector.shape_cast %55 : vector<1x8x128xf32> to vector<8x128xf32>
    %cst_28 = arith.constant dense<0.000000e+00> : vector<8x128xf32>
    %57 = tpu.matmul %48, %12, %cst_28 {dimension_numbers = #tpu.dot_dimension_numbers<[1], [0], [0], [1], [0, 0, 1, 1], [], []>} : vector<8x32xf32>, vector<32x128xf32>, vector<8x128xf32> -> vector<8x128xf32>
    %58 = arith.addf %56, %57 : vector<8x128xf32>
    %59 = vector.extract_strided_slice %58 {offsets = [0, 0], sizes = [8, 32], strides = [1, 1]} : vector<8x128xf32> to vector<8x32xf32>
    %60 = arith.negf %59 : vector<8x32xf32>
    %61 = math.exp %60 : vector<8x32xf32>
    %cst_29 = arith.constant 1.000000e+00 : f32
    %62 = vector.broadcast %cst_29 : f32 to vector<8x32xf32>
    %63 = arith.addf %62, %61 : vector<8x32xf32>
    %64 = arith.divf %62, %63 : vector<8x32xf32>
    %65 = vector.extract_strided_slice %58 {offsets = [0, 32], sizes = [8, 32], strides = [1, 1]} : vector<8x128xf32> to vector<8x32xf32>
    %66 = arith.negf %65 : vector<8x32xf32>
    %67 = math.exp %66 : vector<8x32xf32>
    %cst_30 = arith.constant 1.000000e+00 : f32
    %68 = vector.broadcast %cst_30 : f32 to vector<8x32xf32>
    %69 = arith.addf %68, %67 : vector<8x32xf32>
    %70 = arith.divf %68, %69 : vector<8x32xf32>
    %71 = vector.extract_strided_slice %58 {offsets = [0, 64], sizes = [8, 32], strides = [1, 1]} : vector<8x128xf32> to vector<8x32xf32>
    %72 = math.tanh %71 : vector<8x32xf32>
    %73 = vector.extract_strided_slice %58 {offsets = [0, 96], sizes = [8, 32], strides = [1, 1]} : vector<8x128xf32> to vector<8x32xf32>
    %74 = arith.negf %73 : vector<8x32xf32>
    %75 = math.exp %74 : vector<8x32xf32>
    %cst_31 = arith.constant 1.000000e+00 : f32
    %76 = vector.broadcast %cst_31 : f32 to vector<8x32xf32>
    %77 = arith.addf %76, %75 : vector<8x32xf32>
    %78 = arith.divf %76, %77 : vector<8x32xf32>
    %79 = arith.mulf %70, %49 : vector<8x32xf32>
    %80 = arith.mulf %64, %72 : vector<8x32xf32>
    %81 = arith.addf %79, %80 : vector<8x32xf32>
    %82 = math.tanh %81 : vector<8x32xf32>
    %83 = arith.mulf %78, %82 : vector<8x32xf32>
    %c2_i32_32 = arith.constant 2 : i32
    %84 = arith.muli %arg1, %c2_i32_32 : i32
    %85 = arith.addi %84, %c1_i32 : i32
    %c2_i32_33 = arith.constant 2 : i32
    %86 = arith.cmpi slt, %85, %c2_i32_33 : i32
    %87 = arith.select %86, %83, %48 : vector<8x32xf32>
    %88 = arith.select %86, %81, %49 : vector<8x32xf32>
    %89 = arith.index_cast %c1_i32 : i32 to index
    %c0_34 = arith.constant 0 : index
    %c0_35 = arith.constant 0 : index
    %90 = vector.load %arg6[%89, %c0_34, %c0_35] : memref<2x8x32xf32, #tpu.memory_space<vmem>>, vector<1x8x32xf32>
    %91 = vector.shape_cast %90 : vector<1x8x32xf32> to vector<8x32xf32>
    %92 = vector.shape_cast %87 : vector<8x32xf32> to vector<1x8x32xf32>
    tpu.vector_store %arg6[%89, %c0_34, %c0_35], %92 {strides = array<i32>} : memref<2x8x32xf32, #tpu.memory_space<vmem>>, vector<1x8x32xf32>,
    %c2_i32_36 = arith.constant 2 : i32
    %c0_37 = arith.constant 0 : index
    %c0_38 = arith.constant 0 : index
    %93 = vector.load %arg9[%c0_37, %c0_38] : memref<8x32xf32, #tpu.memory_space<vmem>>, vector<8x32xf32>
    tpu.vector_store %arg9[%c0_37, %c0_38], %87 {strides = array<i32>} : memref<8x32xf32, #tpu.memory_space<vmem>>, vector<8x32xf32>,
    %c0_39 = arith.constant 0 : index
    %c0_40 = arith.constant 0 : index
    %94 = vector.load %arg10[%c0_39, %c0_40] : memref<8x32xf32, #tpu.memory_space<vmem>>, vector<8x32xf32>
    tpu.vector_store %arg10[%c0_39, %c0_40], %88 {strides = array<i32>} : memref<8x32xf32, #tpu.memory_space<vmem>>, vector<8x32xf32>,
    %c0_41 = arith.constant 0 : index
    %c0_42 = arith.constant 0 : index
    %95 = vector.load %arg7[%c0_41, %c0_42] : memref<8x32xf32, #tpu.memory_space<vmem>>, vector<8x32xf32>
    tpu.vector_store %arg7[%c0_41, %c0_42], %87 {strides = array<i32>} : memref<8x32xf32, #tpu.memory_space<vmem>>, vector<8x32xf32>,
    %c0_43 = arith.constant 0 : index
    %c0_44 = arith.constant 0 : index
    %96 = vector.load %arg8[%c0_43, %c0_44] : memref<8x32xf32, #tpu.memory_space<vmem>>, vector<8x32xf32>
    tpu.vector_store %arg8[%c0_43, %c0_44], %88 {strides = array<i32>} : memref<8x32xf32, #tpu.memory_space<vmem>>, vector<8x32xf32>,
    return
  }
  func.func @transform_0(%arg0: i32, %arg1: i32) -> (i32, i32, i32) {
    %c0_i32 = arith.constant 0 : i32
    %c0_i32_0 = arith.constant 0 : i32
    return %arg1, %arg0, %c0_i32 : i32, i32, i32
  }
  func.func @transform_1(%arg0: i32, %arg1: i32) -> (i32, i32) {
    %c0_i32 = arith.constant 0 : i32
    %c0_i32_0 = arith.constant 0 : i32
    %c0_i32_1 = arith.constant 0 : i32
    return %c0_i32, %c0_i32_0 : i32, i32
  }
  func.func @transform_2(%arg0: i32, %arg1: i32) -> (i32, i32) {
    %c0_i32 = arith.constant 0 : i32
    %c0_i32_0 = arith.constant 0 : i32
    %c0_i32_1 = arith.constant 0 : i32
    return %c0_i32, %c0_i32_0 : i32, i32
  }
  func.func @transform_3(%arg0: i32, %arg1: i32) -> (i32, i32) {
    %c0_i32 = arith.constant 0 : i32
    %c0_i32_0 = arith.constant 0 : i32
    %c0_i32_1 = arith.constant 0 : i32
    return %c0_i32, %c0_i32_0 : i32, i32
  }
  func.func @transform_4(%arg0: i32, %arg1: i32) -> (i32, i32, i32) {
    %c0_i32 = arith.constant 0 : i32
    %c0_i32_0 = arith.constant 0 : i32
    return %arg1, %arg0, %c0_i32 : i32, i32, i32
  }
  func.func @transform_5(%arg0: i32, %arg1: i32) -> (i32, i32) {
    %c0_i32 = arith.constant 0 : i32
    %c0_i32_0 = arith.constant 0 : i32
    return %arg0, %c0_i32 : i32, i32
  }
  func.func @transform_6(%arg0: i32, %arg1: i32) -> (i32, i32) {
    %c0_i32 = arith.constant 0 : i32
    %c0_i32_0 = arith.constant 0 : i32
    return %arg0, %c0_i32 : i32, i32
  }
}

</mosaic_0001>

<bundles_post_ra>
// kernel: _lambda_.5
= control target key start
LH: loop header
LB: loop body
LE: loop exit
PB: predicated region body
PF: predicated region fallthrough
CT: control target
= control target key end

     0   :  { %12 = vsyncpa [#allocation6], 0  ;;  %vm26_vm0 = vcmask 261120   ;;  %v526_v3 = vmov 0.0   ;;  %s634_s0 = inlined_call_operand.vmem [shape: f32[2,8,32], index: 0, kind: input, shape index: {}]   ;;  %s635_s1 = inlined_call_operand.vmem [shape: f32[32,128], index: 1, kind: input, shape index: {}]   ;;  %s636_s2 = inlined_call_operand.vmem [shape: f32[32,128], index: 2, kind: input, shape index: {}]   ;;  %s637_s3 = inlined_call_operand.vmem [shape: f32[1,128], index: 3, kind: input, shape index: {}]   ;;  %s638_s4 = inlined_call_operand.vmem [shape: f32[2,8,32], index: 4, kind: output, shape index: {0}]   ;;  %s639_s5 = inlined_call_operand.hbm [shape: f32[8,32], index: 5, kind: output, shape index: {1}]   ;;  %s640_s6 = inlined_call_operand.hbm [shape: f32[8,32], index: 6, kind: output, shape index: {2}]  }
   0x1   :  { %v34_v0 = vld [vmem:[%s635_s1 + $0x18] sm:$0xff]  ;;  %v33_v1 = vld [vmem:[%s635_s1 + $0x10] sm:$0xff]  ;;  %437 = vmatprep.subr.mxu1 %v526_v3  ;;  %27 = vst.msk [vmem:[#allocation2] sm:$0xff] %vm26_vm0, %v526_v3  ;;  %28 = vst.msk [vmem:[#allocation3] sm:$0xff] %vm26_vm0, %v526_v3 }
   0x2   :  { %v129_v2 = vld [vmem:[%s636_s2 + $0x18] sm:$0xff]  ;;  %426 = vmatprep.subr.mxu0 %v34_v0  ;;  %v128_v4 = vld [vmem:[%s636_s2 + $0x10] sm:$0xff]  ;;  %v32_v5 = vld [vmem:[%s635_s1 + $0x8] sm:$0xff] }
   0x3   :  { %427 = vmatpush3.msra.mxu0 %v34_v0  ;;  %438 = vmatpush3.msra.mxu1 %v129_v2  ;;  %v29_v6 = vld [vmem:[%s634_s0] sm:$0xff] }
   0x4   :  { %428 = vmatprep.subr.mxu0 %v33_v1  ;;  %439 = vmatprep.subr.mxu1 %v526_v3 }
   0x5   :  { %13 = vsyncpa [#allocation8], 0  ;;  %429 = vmatpush3.msra.mxu0 %v33_v1  ;;  %440 = vmatpush3.msra.mxu1 %v128_v4  ;;  %v31_v7 = vld [vmem:[%s635_s1] sm:$0xff]  ;;  %v127_v8 = vld [vmem:[%s636_s2 + $0x8] sm:$0xff]  ;;  %vm527_vm1 = vmmov 0   ;;  %s529_s17 = smov 32  }
   0x6   :  { %430 = vmatprep.subr.mxu0 %v32_v5  ;;  %441 = vmatprep.subr.mxu1 %v526_v3  ;;  %v30_v9 = vld [vmem:[%s634_s0 + $0x8] sm:$0xff]  ;;  %v126_v10 = vld [vmem:[%s636_s2] sm:$0xff]  ;;  %s528_s2 = smov 64   ;;  %s530_s19 = smov 96  }
   0x7   :  { %431 = vmatpush3.msra.mxu0 %v32_v5  ;;  %434 = vmatprep.mubr.msk.f32.mxu0 %vm26_vm0, %v29_v6  ;;  %v402_v12 = vld [vmem:[%s637_s3] ss:$0 sm:$0xff]  ;;  %s531_s20 = smov [#allocation7]  }
   0x8   :  { %432 = vmatprep.subr.mxu0 %v31_v7  ;;  %442 = vmatpush3.msra.mxu1 %v127_v8  ;;  %v130_v11 = vld [vmem:[#allocation2] sm:$0xff]  ;;  %v131_v21 = vld [vmem:[#allocation3] sm:$0xff]  ;;  %s388_s21 = sshll.u32 %s531_s20, 4  ;;  %s389_s21 = int_to_ptr.vmem [resolvable:$true] %s388_s21 }
   0x9   :  { %433 = vmatpush3.msra.mxu0 %v31_v7  ;;  %443 = vmatprep.subr.mxu1 %v526_v3  ;;  %s482_s22 = scalar_lea.vmem %s389_s21, 128  ;;  %p487_p1 = scmp.lt.s32.totalorder %s389_s21, %s389_s21 }
   0xa   :  { %435 = vmatmul.mubr.msk.f32.vlgmr.msra.gmra.mxu0 %vm26_vm0, %v30_v9  ;;  %444 = vmatpush3.msra.mxu1 %v126_v10  ;;  %p483_p0 = scmp.ne.s32.totalorder %s389_s21, %s482_s22  ;;  %p488_p2 = scmp.lt.s32.totalorder %s482_s22, %s482_s22 }
   0xb   :  { %445 = vmatprep.mubr.msk.f32.mxu1 %vm527_vm1, %v526_v3  ;;  %448 = vmatprep.subr.mxu0 %v526_v3 }
   0xc   :  { %446 = vmatmul.mubr.msk.f32.vlgmr.msra.gmra.mxu1 %vm26_vm0, %v130_v11  ;;  %449 = vmatpush3.msra.mxu0 %v129_v2  ;;  %p489_p3 = por %p488_p2, %p487_p1 }
   0xd   :  { %450 = vmatprep.subr.mxu0 %v526_v3  ;;  %456 = vmatprep.mubr.msk.f32.mxu0 %vm527_vm1, %v526_v3 }
   0xe   :  { %451 = vmatpush3.msra.mxu0 %v128_v4  ;;  %p490_p4 = pnand %p489_p3, %p483_p0 }
   0xf   :  { %452 = vmatprep.subr.mxu0 %v526_v3 }
  0x10   :  { %453 = vmatpush3.msra.mxu0 %v127_v8 }
  0x11   :  { %454 = vmatprep.subr.mxu0 %v526_v3 }
  0x12   :  { %455 = vmatpush3.msra.mxu0 %v126_v10 }
  0xca   :  { %v436_v13 = vpop.f32.mrf.mxu0 }
  0xcb   :  { %v121_v14 = vadd.f32 %v436_v13, %v402_v12 }
  0xcc   :  { %v115_v15 = vpop.f32.mrf.mxu0  ;;  %v202_v16 = vpop.f32.mrf.mxu1 }
  0xcd   :  { %v116_v17 = vadd.f32 %v402_v12, %v115_v15 }
  0xce   :  { %v447_v18 = vpop.f32.mrf.mxu1 }
  0xcf   :  { %v206_v19 = vadd.f32 %v202_v16, %v116_v17 }
  0xd1   :  { %466 = vtanh.f32 %v206_v19  ;;  %v406_v22 = vmul.f32 -1.442695, %v206_v19 }
  0xd3   :  { %468 = vpow2.f32 %v406_v22 }
  0xde   :  { %v467_v20 = vpop.eup %466 }
  0xdf   :  { %220 = vrot.lane.b32.xlu0 %v467_v20, %s528_s2 }
  0xe0   :  { %v469_v23 = vpop.eup %468 }
  0xe1   :  { %v210_v24 = vadd.f32 1.0, %v469_v23 }
  0xe3   :  { %215 = vrot.lane.b32.xlu0 %v131_v21, %s529_s17  ;;  %470 = vrcp.f32 %v210_v24 }
  0xf0   :  { %v471_v25 = vpop.eup %470 }
 0x151   :  { %v221_v26 = vpop.permute.xlu0 %220 }
 0x152   :  { %v223_v27 = vmul.f32 %v471_v25, %v221_v26 }
 0x154   :  { %225 = vrot.lane.b32.xlu1 %v223_v27, %s529_s17 }
 0x155   :  { %v216_v28 = vpop.permute.xlu0 %215 }
 0x156   :  { %v218_v29 = vmul.f32 %v471_v25, %v216_v28 }
 0x1c6   :  { %v226_v30 = vpop.permute.xlu1 %225 }
 0x1c7   :  { %v228_v31 = vadd.f32 %v226_v30, %v218_v29 }
 0x1c9   :  { %472 = vtanh.f32 %v228_v31 }
 0x1d6   :  { %v473_v32 = vpop.eup %472 }
 0x1d7   :  { %231 = vrot.lane.b32.xlu1 %v473_v32, %s528_s2 }
 0x249   :  { %v232_v33 = vpop.permute.xlu1 %231 }
 0x24a   :  { %v234_v34 = vmul.f32 %v471_v25, %v232_v33 }
 0x24c   :  { %246 = vrot.lane.b32.xlu0 %v234_v34, %s529_s17 }
 0x2be   :  { %v247_v35 = vpop.permute.xlu0 %246 }
 0x2bf   :  { %249 = vst.msk [vmem:[%s638_s4] sm:$0xff] %vm26_vm0, %v247_v35  ;;  %457 = vmatmul.mubr.msk.f32.vlgmr.msra.gmra.mxu0 %vm26_vm0, %v247_v35 }
 0x37f   :  { %v320_v36 = vpop.f32.mrf.mxu0 }
 0x380   :  { %v324_v37 = vadd.f32 %v320_v36, %v121_v14 }
 0x381   :  { %v458_v38 = vpop.f32.mrf.mxu0 }
 0x382   :  { %474 = vtanh.f32 %v324_v37  ;;  %v408_v40 = vmul.f32 -1.442695, %v324_v37 }
 0x384   :  { %476 = vpow2.f32 %v408_v40 }
 0x38f   :  { %v475_v39 = vpop.eup %474 }
 0x390   :  { %334 = vrot.lane.b32.xlu1 %v475_v39, %s528_s2 }
 0x391   :  { %v477_v41 = vpop.eup %476 }
 0x392   :  { %v328_v42 = vadd.f32 1.0, %v477_v41 }
 0x394   :  { %478 = vrcp.f32 %v328_v42 }
 0x3a1   :  { %v479_v43 = vpop.eup %478 }
 0x3a2   :  { %v332_v46 = vmul.f32 %v479_v43, %v228_v31 }
 0x402   :  { %v335_v44 = vpop.permute.xlu1 %334 }
 0x403   :  { %v337_v45 = vmul.f32 %v479_v43, %v335_v44 }
 0x405   :  { %339 = vrot.lane.b32.xlu0 %v337_v45, %s529_s17 }
 0x477   :  { %v340_v47 = vpop.permute.xlu0 %339 }
 0x478   :  { %v342_v48 = vadd.f32 %v340_v47, %v332_v46 }
 0x47a   :  { %480 = vtanh.f32 %v342_v48 }
 0x487   :  { %v481_v49 = vpop.eup %480 }
 0x488   :  { %345 = vrot.lane.b32.xlu1 %v481_v49, %s528_s2 }
 0x48c   :  { %364 = vrot.lane.b32.xlu1 %v342_v48, %s530_s19 }
 0x4fa   :  { %v346_v50 = vpop.permute.xlu1 %345 }
 0x4fb   :  { %v348_v51 = vmul.f32 %v479_v43, %v346_v50 }
 0x4fd   :  { %357 = vrot.lane.b32.xlu0 %v348_v51, %s529_s17 }
 0x4fe   :  { %v365_v52 = vpop.permute.xlu1 %364 }
 0x4ff   :  { %367 = vst.msk [vmem:[#allocation3] sm:$0xff] %vm26_vm0, %v365_v52  ;;  %369 = vst.msk [vmem:[#allocation7] sm:$0xff] %vm26_vm0, %v365_v52 }
 0x500   :  { %493 = shalt.err (!%p490_p4)
}
 0x501   :  { %391 = dma.vmem_to_hbm [thread:$0]  %s389_s21, 128, %s640_s6, [#allocation8]  }
 0x502   :  { %s532_s25 = smov [#allocation5]  }
 0x503   :  { %s378_s26 = sshll.u32 %s532_s25, 4  ;;  %s379_s26 = int_to_ptr.vmem [resolvable:$true] %s378_s26 }
 0x504   :  { %s502_s29 = scalar_lea.vmem %s379_s26, 128  ;;  %p507_p6 = scmp.lt.s32.totalorder %s379_s26, %s379_s26 }
 0x505   :  { %p503_p5 = scmp.ne.s32.totalorder %s379_s26, %s502_s29  ;;  %p508_p7 = scmp.lt.s32.totalorder %s502_s29, %s502_s29 }
 0x507   :  { %p509_p8 = por %p508_p7, %p507_p6 }
 0x509   :  { %p510_p9 = pnand %p509_p8, %p503_p5 }
 0x56f   :  { %v358_v53 = vpop.permute.xlu0 %357 }
 0x570   :  { %409 = vst.msk [vmem:[%s638_s4 + $0x8] sm:$0xff] %vm26_vm0, %v358_v53  ;;  %362 = vst.msk [vmem:[#allocation2] sm:$0xff] %vm26_vm0, %v358_v53 }
 0x571   :  { %368 = vst.msk [vmem:[#allocation5] sm:$0xff] %vm26_vm0, %v358_v53 }
 0x572   :  { %513 = shalt.err (!%p510_p9)
}
 0x573   :  { %381 = dma.vmem_to_hbm [thread:$0]  %s379_s26, 128, %s639_s5, [#allocation6]  }
 0x574   :  { %522 = dma.done.wait [#allocation6], 128  }
 0x575   :  { %523 = vsyncadd [#allocation6], 4294967168 }
 0x576   :  { %524 = dma.done.wait [#allocation8], 128  }
 0x577   :  { %525 = vsyncadd [#allocation8], 4294967168 }
 0x578   :  { %400 = vsyncpa [#allocation6], 1 }
 0x579   :  { %401 = vsyncpa [#allocation8], 1 }

// kernel: _lambda_.4
= control target key start
LH: loop header
LB: loop body
LE: loop exit
PB: predicated region body
PF: predicated region fallthrough
CT: control target
= control target key end

     0   :  { %vm24_vm0 = vcmask 261120   ;;  %v763_v2 = vmov 0.0   ;;  %vm764_vm1 = vmmov 0   ;;  %s765_s17 = smov 64   ;;  %s766_s18 = smov 32   ;;  %s951_s1 = inlined_call_operand.vmem [shape: f32[32,128], index: 1, kind: input, shape index: {}]   ;;  %s952_s2 = inlined_call_operand.vmem [shape: f32[32,128], index: 2, kind: input, shape index: {}]   ;;  %s953_s0 = inlined_call_operand.vmem [shape: f32[4,8,32], index: 0, kind: input, shape index: {}]   ;;  %s954_s3 = inlined_call_operand.vmem [shape: f32[1,128], index: 3, kind: input, shape index: {}]   ;;  %s955_s4 = inlined_call_operand.vmem [shape: f32[4,8,32], index: 4, kind: output, shape index: {0}]   ;;  %s956_s6 = inlined_call_operand.vmem [shape: f32[8,32], index: 6, kind: output, shape index: {2}]   ;;  %s957_s5 = inlined_call_operand.vmem [shape: f32[8,32], index: 5, kind: output, shape index: {1}]  }
   0x1   :  { %v34_v0 = vld [vmem:[%s951_s1 + $0x18] sm:$0xff]  ;;  %v33_v1 = vld [vmem:[%s951_s1 + $0x10] sm:$0xff]  ;;  %682 = vmatprep.subr.mxu1 %v763_v2  ;;  %25 = vst.msk [vmem:[#allocation2] sm:$0xff] %vm24_vm0, %v763_v2  ;;  %26 = vst.msk [vmem:[#allocation3] sm:$0xff] %vm24_vm0, %v763_v2  ;;  %690 = vmatprep.mubr.msk.f32.mxu1 %vm764_vm1, %v763_v2  ;;  %s767_s27 = smov 96  }
   0x2   :  { %v813_v3 = vld [vmem:[%s952_s2 + $0x18] sm:$0xff]  ;;  %668 = vmatprep.subr.mxu0 %v34_v0  ;;  %v825_v4 = vld [vmem:[%s952_s2 + $0x10] sm:$0xff]  ;;  %v32_v5 = vld [vmem:[%s951_s1 + $0x8] sm:$0xff] }
   0x3   :  { %683 = vmatpush3.msra.mxu1 %v813_v3  ;;  %669 = vmatpush3.msra.mxu0 %v34_v0  ;;  %v27_v6 = vld [vmem:[%s953_s0] sm:$0xff]  ;;  %v838_v7 = vld [vmem:[%s952_s2 + $0x8] sm:$0xff]  ;;  %v29_v31 = vld [vmem:[%s953_s0 + $0x10] sm:$0xff] }
   0x4   :  { %684 = vmatprep.subr.mxu1 %v763_v2  ;;  %670 = vmatprep.subr.mxu0 %v33_v1  ;;  %v31_v8 = vld [vmem:[%s951_s1] sm:$0xff]  ;;  %v28_v10 = vld [vmem:[%s953_s0 + $0x8] sm:$0xff]  ;;  %v30_v32 = vld [vmem:[%s953_s0 + $0x18] sm:$0xff] }
   0x5   :  { %685 = vmatpush3.msra.mxu1 %v825_v4  ;;  %671 = vmatpush3.msra.mxu0 %v33_v1  ;;  %v848_v9 = vld [vmem:[%s952_s2] sm:$0xff] }
   0x6   :  { %686 = vmatprep.subr.mxu1 %v763_v2  ;;  %672 = vmatprep.subr.mxu0 %v32_v5  ;;  %v880_v14 = vld [vmem:[%s954_s3] ss:$0 sm:$0xff] }
   0x7   :  { %676 = vmatprep.mubr.msk.f32.mxu0 %vm24_vm0, %v27_v6  ;;  %673 = vmatpush3.msra.mxu0 %v32_v5 }
   0x8   :  { %687 = vmatpush3.msra.mxu1 %v838_v7  ;;  %674 = vmatprep.subr.mxu0 %v31_v8  ;;  %v148_v11 = vld [vmem:[#allocation2] sm:$0xff]  ;;  %v149_v20 = vld [vmem:[#allocation3] sm:$0xff] }
   0x9   :  { %688 = vmatprep.subr.mxu1 %v763_v2  ;;  %675 = vmatpush3.msra.mxu0 %v31_v8 }
   0xa   :  { %689 = vmatpush3.msra.mxu1 %v848_v9  ;;  %677 = vmatmul.mubr.msk.f32.vlgmr.msra.gmra.mxu0 %vm24_vm0, %v28_v10 }
   0xb   :  { %691 = vmatmul.mubr.msk.f32.vlgmr.msra.gmra.mxu1 %vm24_vm0, %v148_v11  ;;  %693 = vmatprep.subr.mxu0 %v763_v2 }
   0xc   :  { %704 = vmatprep.subr.mxu1 %v763_v2  ;;  %694 = vmatpush3.msra.mxu0 %v813_v3 }
   0xd   :  { %705 = vmatpush3.msra.mxu1 %v813_v3  ;;  %695 = vmatprep.subr.mxu0 %v763_v2 }
   0xe   :  { %706 = vmatprep.subr.mxu1 %v763_v2  ;;  %696 = vmatpush3.msra.mxu0 %v825_v4 }
   0xf   :  { %707 = vmatpush3.msra.mxu1 %v825_v4  ;;  %697 = vmatprep.subr.mxu0 %v763_v2 }
  0x10   :  { %708 = vmatprep.subr.mxu1 %v763_v2  ;;  %698 = vmatpush3.msra.mxu0 %v838_v7 }
  0x11   :  { %709 = vmatpush3.msra.mxu1 %v838_v7  ;;  %699 = vmatprep.subr.mxu0 %v763_v2 }
  0x12   :  { %710 = vmatprep.subr.mxu1 %v763_v2  ;;  %700 = vmatpush3.msra.mxu0 %v848_v9 }
  0x13   :  { %711 = vmatpush3.msra.mxu1 %v848_v9  ;;  %712 = vmatprep.mubr.msk.f32.mxu1 %vm764_vm1, %v763_v2 }
  0x14   :  { %715 = vmatprep.subr.mxu0 %v763_v2  ;;  %679 = vmatprep.mubr.msk.f32.mxu0 %vm24_vm0, %v29_v31 }
  0x15   :  { %680 = vmatmul.mubr.msk.f32.gmra.mxu0 %vm24_vm0, %v30_v32 }
  0x16   :  { %701 = vmatprep.mubr.msk.f32.mxu0 %vm764_vm1, %v763_v2 }
  0xca   :  { %v678_v12 = vpop.f32.mrf.mxu0 }
  0xcb   :  { %v220_v13 = vpop.f32.mrf.mxu1  ;;  %v127_v39 = vadd.f32 %v678_v12, %v880_v14 }
  0xcc   :  { %v121_v15 = vpop.f32.mrf.mxu0 }
  0xcd   :  { %v692_v16 = vpop.f32.mrf.mxu1  ;;  %v122_v17 = vadd.f32 %v880_v14, %v121_v15 }
  0xcf   :  { %v224_v18 = vadd.f32 %v220_v13, %v122_v17 }
  0xd1   :  { %731 = vtanh.f32 %v224_v18  ;;  %v630_v21 = vmul.f32 -1.442695, %v224_v18 }
  0xd3   :  { %733 = vpow2.f32 %v630_v21 }
  0xd5   :  { %v681_v37 = vpop.f32.mrf.mxu0 }
  0xd6   :  { %v137_v11 = vadd.f32 %v681_v37, %v880_v14 }
  0xd7   :  { %v131_v38 = vpop.f32.mrf.mxu0 }
  0xd8   :  { %v132_v57 = vadd.f32 %v880_v14, %v131_v38 }
  0xde   :  { %v732_v19 = vpop.eup %731 }
  0xdf   :  { %238 = vrot.lane.b32.xlu0 %v732_v19, %s765_s17 }
  0xe0   :  { %v734_v22 = vpop.eup %733 }
  0xe1   :  { %v228_v23 = vadd.f32 1.0, %v734_v22 }
  0xe3   :  { %233 = vrot.lane.b32.xlu0 %v149_v20, %s766_s18  ;;  %735 = vrcp.f32 %v228_v23 }
  0xf0   :  { %v736_v24 = vpop.eup %735 }
 0x151   :  { %v239_v25 = vpop.permute.xlu0 %238 }
 0x152   :  { %v241_v26 = vmul.f32 %v736_v24, %v239_v25 }
 0x154   :  { %243 = vrot.lane.b32.xlu1 %v241_v26, %s766_s18 }
 0x155   :  { %v234_v27 = vpop.permute.xlu0 %233 }
 0x156   :  { %v236_v28 = vmul.f32 %v736_v24, %v234_v27 }
 0x1c6   :  { %v244_v29 = vpop.permute.xlu1 %243 }
 0x1c7   :  { %v246_v30 = vadd.f32 %v244_v29, %v236_v28 }
 0x1c9   :  { %737 = vtanh.f32 %v246_v30 }
 0x1d6   :  { %v738_v33 = vpop.eup %737 }
 0x1d7   :  { %249 = vrot.lane.b32.xlu1 %v738_v33, %s765_s17 }
 0x249   :  { %v250_v34 = vpop.permute.xlu1 %249 }
 0x24a   :  { %v252_v35 = vmul.f32 %v736_v24, %v250_v34 }
 0x24c   :  { %264 = vrot.lane.b32.xlu0 %v252_v35, %s766_s18 }
 0x2be   :  { %v265_v36 = vpop.permute.xlu0 %264 }
 0x2bf   :  { %267 = vst.msk [vmem:[%s955_s4] sm:$0xff] %vm24_vm0, %v265_v36  ;;  %702 = vmatmul.mubr.msk.f32.vlgmr.msra.gmra.mxu0 %vm24_vm0, %v265_v36 }
 0x2c0   :  { %716 = vmatpush3.msra.mxu0 %v813_v3  ;;  %723 = vmatprep.mubr.msk.f32.mxu0 %vm764_vm1, %v763_v2 }
 0x2c1   :  { %717 = vmatprep.subr.mxu0 %v763_v2 }
 0x2c2   :  { %718 = vmatpush3.msra.mxu0 %v825_v4 }
 0x2c3   :  { %719 = vmatprep.subr.mxu0 %v763_v2 }
 0x2c4   :  { %720 = vmatpush3.msra.mxu0 %v838_v7 }
 0x2c5   :  { %721 = vmatprep.subr.mxu0 %v763_v2 }
 0x2c6   :  { %722 = vmatpush3.msra.mxu0 %v848_v9 }
 0x37f   :  { %v338_v40 = vpop.f32.mrf.mxu0 }
 0x380   :  { %v342_v41 = vadd.f32 %v338_v40, %v127_v39 }
 0x381   :  { %v703_v42 = vpop.f32.mrf.mxu0 }
 0x382   :  { %739 = vtanh.f32 %v342_v41  ;;  %v632_v44 = vmul.f32 -1.442695, %v342_v41 }
 0x384   :  { %741 = vpow2.f32 %v632_v44 }
 0x38f   :  { %v740_v43 = vpop.eup %739 }
 0x390   :  { %352 = vrot.lane.b32.xlu1 %v740_v43, %s765_s17 }
 0x391   :  { %v742_v45 = vpop.eup %741 }
 0x392   :  { %v346_v46 = vadd.f32 1.0, %v742_v45 }
 0x394   :  { %743 = vrcp.f32 %v346_v46 }
 0x3a1   :  { %v744_v47 = vpop.eup %743 }
 0x3a2   :  { %v350_v50 = vmul.f32 %v744_v47, %v246_v30 }
 0x402   :  { %v353_v48 = vpop.permute.xlu1 %352 }
 0x403   :  { %v355_v49 = vmul.f32 %v744_v47, %v353_v48 }
 0x405   :  { %357 = vrot.lane.b32.xlu0 %v355_v49, %s766_s18 }
 0x477   :  { %v358_v51 = vpop.permute.xlu0 %357 }
 0x478   :  { %v360_v52 = vadd.f32 %v358_v51, %v350_v50 }
 0x47a   :  { %745 = vtanh.f32 %v360_v52 }
 0x487   :  { %v746_v53 = vpop.eup %745 }
 0x488   :  { %363 = vrot.lane.b32.xlu1 %v746_v53, %s765_s17 }
 0x4fa   :  { %v364_v54 = vpop.permute.xlu1 %363 }
 0x4fb   :  { %v366_v55 = vmul.f32 %v744_v47, %v364_v54 }
 0x4fd   :  { %375 = vrot.lane.b32.xlu0 %v366_v55, %s766_s18 }
 0x56f   :  { %v376_v56 = vpop.permute.xlu0 %375 }
 0x570   :  { %633 = vst.msk [vmem:[%s955_s4 + $0x8] sm:$0xff] %vm24_vm0, %v376_v56  ;;  %713 = vmatmul.mubr.msk.f32.vlgmr.msra.gmra.mxu1 %vm24_vm0, %v376_v56 }
 0x630   :  { %v450_v58 = vpop.f32.mrf.mxu1 }
 0x631   :  { %v454_v59 = vadd.f32 %v450_v58, %v132_v57 }
 0x632   :  { %v714_v60 = vpop.f32.mrf.mxu1 }
 0x633   :  { %747 = vtanh.f32 %v454_v59  ;;  %v635_v62 = vmul.f32 -1.442695, %v454_v59 }
 0x635   :  { %749 = vpow2.f32 %v635_v62 }
 0x640   :  { %v748_v61 = vpop.eup %747 }
 0x641   :  { %464 = vrot.lane.b32.xlu1 %v748_v61, %s765_s17 }
 0x642   :  { %v750_v63 = vpop.eup %749 }
 0x643   :  { %v458_v0 = vadd.f32 1.0, %v750_v63 }
 0x645   :  { %751 = vrcp.f32 %v458_v0 }
 0x652   :  { %v752_v1 = vpop.eup %751 }
 0x653   :  { %v462_v4 = vmul.f32 %v752_v1, %v360_v52 }
 0x6b3   :  { %v465_v2 = vpop.permute.xlu1 %464 }
 0x6b4   :  { %v467_v3 = vmul.f32 %v752_v1, %v465_v2 }
 0x6b6   :  { %469 = vrot.lane.b32.xlu0 %v467_v3, %s766_s18 }
 0x728   :  { %v470_v5 = vpop.permute.xlu0 %469 }
 0x729   :  { %v472_v6 = vadd.f32 %v470_v5, %v462_v4 }
 0x72b   :  { %753 = vtanh.f32 %v472_v6 }
 0x738   :  { %v754_v7 = vpop.eup %753 }
 0x739   :  { %475 = vrot.lane.b32.xlu1 %v754_v7, %s765_s17 }
 0x7ab   :  { %v476_v8 = vpop.permute.xlu1 %475 }
 0x7ac   :  { %v478_v9 = vmul.f32 %v752_v1, %v476_v8 }
 0x7ae   :  { %487 = vrot.lane.b32.xlu0 %v478_v9, %s766_s18 }
 0x820   :  { %v488_v10 = vpop.permute.xlu0 %487 }
 0x821   :  { %636 = vst.msk [vmem:[%s955_s4 + $0x10] sm:$0xff] %vm24_vm0, %v488_v10  ;;  %724 = vmatmul.mubr.msk.f32.vlgmr.msra.gmra.mxu0 %vm24_vm0, %v488_v10 }
 0x8e1   :  { %v562_v12 = vpop.f32.mrf.mxu0 }
 0x8e2   :  { %v566_v13 = vadd.f32 %v562_v12, %v137_v11 }
 0x8e3   :  { %v725_v15 = vpop.f32.mrf.mxu0 }
 0x8e4   :  { %755 = vtanh.f32 %v566_v13  ;;  %v638_v17 = vmul.f32 -1.442695, %v566_v13 }
 0x8e6   :  { %757 = vpow2.f32 %v638_v17 }
 0x8f1   :  { %v756_v16 = vpop.eup %755 }
 0x8f2   :  { %576 = vrot.lane.b32.xlu1 %v756_v16, %s765_s17 }
 0x8f3   :  { %v758_v18 = vpop.eup %757 }
 0x8f4   :  { %v570_v19 = vadd.f32 1.0, %v758_v18 }
 0x8f6   :  { %759 = vrcp.f32 %v570_v19 }
 0x903   :  { %v760_v20 = vpop.eup %759 }
 0x904   :  { %v574_v23 = vmul.f32 %v760_v20, %v472_v6 }
 0x964   :  { %v577_v21 = vpop.permute.xlu1 %576 }
 0x965   :  { %v579_v22 = vmul.f32 %v760_v20, %v577_v21 }
 0x967   :  { %581 = vrot.lane.b32.xlu0 %v579_v22, %s766_s18 }
 0x9d9   :  { %v582_v24 = vpop.permute.xlu0 %581 }
 0x9da   :  { %v584_v14 = vadd.f32 %v582_v24, %v574_v23 }
 0x9dc   :  { %761 = vtanh.f32 %v584_v14 }
 0x9e9   :  { %v762_v25 = vpop.eup %761 }
 0x9ea   :  { %587 = vrot.lane.b32.xlu1 %v762_v25, %s765_s17 }
 0x9ee   :  { %606 = vrot.lane.b32.xlu1 %v584_v14, %s767_s27 }
 0xa5c   :  { %v588_v26 = vpop.permute.xlu1 %587 }
 0xa5d   :  { %v590_v27 = vmul.f32 %v760_v20, %v588_v26 }
 0xa5f   :  { %599 = vrot.lane.b32.xlu0 %v590_v27, %s766_s18 }
 0xa60   :  { %v607_v28 = vpop.permute.xlu1 %606 }
 0xa61   :  { %609 = vst.msk [vmem:[#allocation3] sm:$0xff] %vm24_vm0, %v607_v28  ;;  %611 = vst.msk [vmem:[%s956_s6] sm:$0xff] %vm24_vm0, %v607_v28 }
 0xad1   :  { %v600_v29 = vpop.permute.xlu0 %599 }
 0xad2   :  { %639 = vst.msk [vmem:[%s955_s4 + $0x18] sm:$0xff] %vm24_vm0, %v600_v29  ;;  %604 = vst.msk [vmem:[#allocation2] sm:$0xff] %vm24_vm0, %v600_v29 }
 0xad3   :  { %610 = vst.msk [vmem:[%s957_s5] sm:$0xff] %vm24_vm0, %v600_v29 }

// kernel: _lambda_.3
= control target key start
LH: loop header
LB: loop body
LE: loop exit
PB: predicated region body
PF: predicated region fallthrough
CT: control target
= control target key end

     0   :  { %vm24_vm0 = vcmask 261120   ;;  %v1366_v0 = vmov 0.0   ;;  %vm1367_vm1 = vmmov 0   ;;  %vm44_vm2 = vcmask 130048   ;;  %s1368_s13 = smov 64   ;;  %s1369_s14 = smov 32   ;;  %s1656_s1 = inlined_call_operand.vmem [shape: f32[16,128], index: 1, kind: input, shape index: {}]   ;;  %s1657_s2 = inlined_call_operand.vmem [shape: f32[32,128], index: 2, kind: input, shape index: {}]   ;;  %s1658_s0 = inlined_call_operand.vmem [shape: f32[8,8,16], index: 0, kind: input, shape index: {}]   ;;  %s1659_s3 = inlined_call_operand.vmem [shape: f32[1,128], index: 3, kind: input, shape index: {}]   ;;  %s1660_s4 = inlined_call_operand.vmem [shape: f32[8,8,32], index: 4, kind: output, shape index: {0}]   ;;  %s1661_s6 = inlined_call_operand.vmem [shape: f32[8,32], index: 6, kind: output, shape index: {2}]   ;;  %s1662_s5 = inlined_call_operand.vmem [shape: f32[8,32], index: 5, kind: output, shape index: {1}]  }
   0x1   :  { %1209 = vmatprep.subr.mxu1 %v1366_v0  ;;  %v36_v1 = vld [vmem:[%s1656_s1 + $0x8] sm:$0xff]  ;;  %v1413_v2 = vld [vmem:[%s1657_s2 + $0x18] sm:$0xff]  ;;  %v35_v3 = vld [vmem:[%s1656_s1] sm:$0xff]  ;;  %1217 = vmatprep.mubr.msk.f32.mxu1 %vm1367_vm1, %v1366_v0  ;;  %25 = vst.msk [vmem:[#allocation2] sm:$0xff] %vm24_vm0, %v1366_v0 }
   0x2   :  { %26 = vst.msk [vmem:[#allocation3] sm:$0xff] %vm24_vm0, %v1366_v0  ;;  %1193 = vmatprep.subr.mxu0 %v36_v1  ;;  %1210 = vmatpush3.msra.mxu1 %v1413_v2  ;;  %v1428_v4 = vld [vmem:[%s1657_s2 + $0x10] sm:$0xff]  ;;  %v27_v5 = vld [vmem:[%s1658_s0] sm:$0xff]  ;;  %v28_v6 = vld [vmem:[%s1658_s0 + $0x8] sm:$0xff] }
   0x3   :  { %1194 = vmatpush3.msra.mxu0 %v36_v1  ;;  %1211 = vmatprep.subr.mxu1 %v1366_v0  ;;  %v1441_v7 = vld [vmem:[%s1657_s2 + $0x8] sm:$0xff]  ;;  %v1449_v8 = vld [vmem:[%s1657_s2] sm:$0xff]  ;;  %v29_v47 = vld [vmem:[%s1658_s0 + $0x10] sm:$0xff] }
   0x4   :  { %1195 = vmatprep.subr.mxu0 %v35_v3  ;;  %1212 = vmatpush3.msra.mxu1 %v1428_v4  ;;  %v1478_v11 = vld [vmem:[%s1659_s3] ss:$0 sm:$0xff]  ;;  %v30_v48 = vld [vmem:[%s1658_s0 + $0x18] sm:$0xff]  ;;  %v32_v50 = vld [vmem:[%s1658_s0 + $0x28] sm:$0xff]  ;;  %s1370_s3 = smov 96  }
   0x5   :  { %1196 = vmatpush3.msra.mxu0 %v35_v3  ;;  %1197 = vmatprep.mubr.msk.f32.mxu0 %vm44_vm2, %v27_v5  ;;  %v31_v49 = vld [vmem:[%s1658_s0 + $0x20] sm:$0xff]  ;;  %v33_v51 = vld [vmem:[%s1658_s0 + $0x30] sm:$0xff]  ;;  %v34_v52 = vld [vmem:[%s1658_s0 + $0x38] sm:$0xff] }
   0x6   :  { %1213 = vmatprep.subr.mxu1 %v1366_v0  ;;  %1198 = vmatmul.mubr.msk.f32.vlgmr.msra.gmra.mxu0 %vm44_vm2, %v28_v6 }
   0x7   :  { %1214 = vmatpush3.msra.mxu1 %v1441_v7  ;;  %1231 = vmatprep.subr.mxu0 %v1366_v0 }
   0x8   :  { %1215 = vmatprep.subr.mxu1 %v1366_v0  ;;  %v186_v9 = vld [vmem:[#allocation2] sm:$0xff]  ;;  %1232 = vmatpush3.msra.mxu0 %v1413_v2 }
   0x9   :  { %1216 = vmatpush3.msra.mxu1 %v1449_v8  ;;  %1233 = vmatprep.subr.mxu0 %v1366_v0  ;;  %v187_v18 = vld [vmem:[#allocation3] sm:$0xff] }
   0xa   :  { %1218 = vmatmul.mubr.msk.f32.vlgmr.msra.gmra.mxu1 %vm24_vm0, %v186_v9  ;;  %1220 = vmatprep.subr.mxu1 %v1366_v0 }
   0xb   :  { %1221 = vmatpush3.msra.mxu1 %v1413_v2  ;;  %1228 = vmatprep.mubr.msk.f32.mxu1 %vm1367_vm1, %v1366_v0 }
   0xc   :  { %1222 = vmatprep.subr.mxu1 %v1366_v0  ;;  %1234 = vmatpush3.msra.mxu0 %v1428_v4 }
   0xd   :  { %1223 = vmatpush3.msra.mxu1 %v1428_v4  ;;  %1235 = vmatprep.subr.mxu0 %v1366_v0 }
   0xe   :  { %1224 = vmatprep.subr.mxu1 %v1366_v0  ;;  %1236 = vmatpush3.msra.mxu0 %v1441_v7 }
   0xf   :  { %1225 = vmatpush3.msra.mxu1 %v1441_v7  ;;  %1237 = vmatprep.subr.mxu0 %v1366_v0 }
  0x10   :  { %1226 = vmatprep.subr.mxu1 %v1366_v0  ;;  %1238 = vmatpush3.msra.mxu0 %v1449_v8 }
  0x11   :  { %1227 = vmatpush3.msra.mxu1 %v1449_v8  ;;  %1253 = vmatprep.subr.mxu0 %v1366_v0 }
  0x12   :  { %1242 = vmatprep.subr.mxu1 %v1366_v0  ;;  %1200 = vmatprep.mubr.msk.f32.mxu0 %vm44_vm2, %v29_v47 }
  0x13   :  { %1201 = vmatmul.mubr.msk.f32.gmra.mxu0 %vm44_vm2, %v30_v48 }
  0x14   :  { %1203 = vmatprep.mubr.msk.f32.mxu0 %vm44_vm2, %v31_v49 }
  0x17   :  { %1204 = vmatmul.mubr.msk.f32.gmra.mxu0 %vm44_vm2, %v32_v50 }
  0x18   :  { %1206 = vmatprep.mubr.msk.f32.mxu0 %vm44_vm2, %v33_v51 }
  0x1b   :  { %1207 = vmatmul.mubr.msk.f32.gmra.mxu0 %vm44_vm2, %v34_v52 }
  0x1c   :  { %1239 = vmatprep.mubr.msk.f32.mxu0 %vm1367_vm1, %v1366_v0 }
  0xc6   :  { %v1199_v10 = vpop.f32.mrf.mxu0 }
  0xc7   :  { %v141_v33 = vadd.f32 %v1199_v10, %v1478_v11 }
  0xc8   :  { %v135_v12 = vpop.f32.mrf.mxu0 }
  0xc9   :  { %v136_v13 = vadd.f32 %v1478_v11, %v135_v12 }
  0xca   :  { %v259_v14 = vpop.f32.mrf.mxu1 }
  0xcb   :  { %v263_v15 = vadd.f32 %v259_v14, %v136_v13 }
  0xcc   :  { %v1219_v16 = vpop.f32.mrf.mxu1 }
  0xcd   :  { %1302 = vtanh.f32 %v263_v15  ;;  %v1121_v19 = vmul.f32 -1.442695, %v263_v15 }
  0xcf   :  { %1304 = vpow2.f32 %v1121_v19 }
  0xd3   :  { %v1202_v57 = vpop.f32.mrf.mxu0 }
  0xd5   :  { %v145_v58 = vpop.f32.mrf.mxu0 }
  0xd6   :  { %v146_v63 = vadd.f32 %v1478_v11, %v145_v58 }
  0xd7   :  { %v1547_v59 = vpop.f32.mrf.mxu0 }
  0xd9   :  { %v1549_v60 = vpop.f32.mrf.mxu0 }
  0xda   :  { %v1303_v17 = vpop.eup %1302 }
  0xdb   :  { %277 = vrot.lane.b32.xlu0 %v1303_v17, %s1368_s13  ;;  %v1551_v61 = vpop.f32.mrf.mxu0 }
  0xdc   :  { %v1305_v20 = vpop.eup %1304 }
  0xdd   :  { %v267_v21 = vadd.f32 1.0, %v1305_v20  ;;  %v1553_v62 = vpop.f32.mrf.mxu0 }
  0xdf   :  { %272 = vrot.lane.b32.xlu0 %v187_v18, %s1369_s14  ;;  %1306 = vrcp.f32 %v267_v21 }
  0xec   :  { %v1307_v22 = vpop.eup %1306 }
 0x14d   :  { %v278_v23 = vpop.permute.xlu0 %277 }
 0x14e   :  { %v280_v24 = vmul.f32 %v1307_v22, %v278_v23  ;;  %v151_v23 = vadd.f32 %v1202_v57, %v1478_v11 }
 0x150   :  { %282 = vrot.lane.b32.xlu1 %v280_v24, %s1369_s14 }
 0x151   :  { %v273_v25 = vpop.permute.xlu0 %272 }
 0x152   :  { %v275_v26 = vmul.f32 %v1307_v22, %v273_v25 }
 0x1c2   :  { %v283_v27 = vpop.permute.xlu1 %282 }
 0x1c3   :  { %v285_v28 = vadd.f32 %v283_v27, %v275_v26 }
 0x1c5   :  { %1308 = vtanh.f32 %v285_v28 }
 0x1d2   :  { %v1309_v29 = vpop.eup %1308 }
 0x1d3   :  { %288 = vrot.lane.b32.xlu1 %v1309_v29, %s1368_s13 }
 0x245   :  { %v289_v30 = vpop.permute.xlu1 %288 }
 0x246   :  { %v291_v31 = vmul.f32 %v1307_v22, %v289_v30 }
 0x248   :  { %303 = vrot.lane.b32.xlu0 %v291_v31, %s1369_s14 }
 0x2ba   :  { %v304_v32 = vpop.permute.xlu0 %303 }
 0x2bb   :  { %306 = vst.msk [vmem:[%s1660_s4] sm:$0xff] %vm24_vm0, %v304_v32  ;;  %1229 = vmatmul.mubr.msk.f32.vlgmr.msra.gmra.mxu1 %vm24_vm0, %v304_v32 }
 0x2bc   :  { %1243 = vmatpush3.msra.mxu1 %v1413_v2  ;;  %1250 = vmatprep.mubr.msk.f32.mxu1 %vm1367_vm1, %v1366_v0 }
 0x2bd   :  { %1244 = vmatprep.subr.mxu1 %v1366_v0 }
 0x2be   :  { %1245 = vmatpush3.msra.mxu1 %v1428_v4 }
 0x2bf   :  { %1246 = vmatprep.subr.mxu1 %v1366_v0 }
 0x2c0   :  { %1247 = vmatpush3.msra.mxu1 %v1441_v7 }
 0x2c1   :  { %1248 = vmatprep.subr.mxu1 %v1366_v0 }
 0x2c2   :  { %1249 = vmatpush3.msra.mxu1 %v1449_v8 }
 0x2c3   :  { %1264 = vmatprep.subr.mxu1 %v1366_v0 }
 0x37b   :  { %v377_v34 = vpop.f32.mrf.mxu1 }
 0x37c   :  { %v381_v35 = vadd.f32 %v377_v34, %v141_v33 }
 0x37d   :  { %v1230_v36 = vpop.f32.mrf.mxu1 }
 0x37e   :  { %1310 = vtanh.f32 %v381_v35  ;;  %v1123_v38 = vmul.f32 -1.442695, %v381_v35 }
 0x380   :  { %1312 = vpow2.f32 %v1123_v38 }
 0x38b   :  { %v1311_v37 = vpop.eup %1310 }
 0x38c   :  { %391 = vrot.lane.b32.xlu1 %v1311_v37, %s1368_s13 }
 0x38d   :  { %v1313_v39 = vpop.eup %1312 }
 0x38e   :  { %v385_v40 = vadd.f32 1.0, %v1313_v39 }
 0x390   :  { %1314 = vrcp.f32 %v385_v40 }
 0x39d   :  { %v1315_v41 = vpop.eup %1314 }
 0x39e   :  { %v389_v44 = vmul.f32 %v1315_v41, %v285_v28 }
 0x3fe   :  { %v392_v42 = vpop.permute.xlu1 %391 }
 0x3ff   :  { %v394_v43 = vmul.f32 %v1315_v41, %v392_v42 }
 0x401   :  { %396 = vrot.lane.b32.xlu0 %v394_v43, %s1369_s14 }
 0x473   :  { %v397_v45 = vpop.permute.xlu0 %396 }
 0x474   :  { %v399_v46 = vadd.f32 %v397_v45, %v389_v44 }
 0x476   :  { %1316 = vtanh.f32 %v399_v46 }
 0x483   :  { %v1317_v53 = vpop.eup %1316 }
 0x484   :  { %402 = vrot.lane.b32.xlu1 %v1317_v53, %s1368_s13 }
 0x4f6   :  { %v403_v54 = vpop.permute.xlu1 %402 }
 0x4f7   :  { %v405_v55 = vmul.f32 %v1315_v41, %v403_v54  ;;  %v156_v41 = vadd.f32 %v1478_v11, %v1549_v60  ;;  %v161_v60 = vadd.f32 %v1547_v59, %v1478_v11 }
 0x4f9   :  { %414 = vrot.lane.b32.xlu0 %v405_v55, %s1369_s14 }
 0x56b   :  { %v415_v56 = vpop.permute.xlu0 %414 }
 0x56c   :  { %1124 = vst.msk [vmem:[%s1660_s4 + $0x8] sm:$0xff] %vm24_vm0, %v415_v56  ;;  %1240 = vmatmul.mubr.msk.f32.vlgmr.msra.gmra.mxu0 %vm24_vm0, %v415_v56 }
 0x56d   :  { %1254 = vmatpush3.msra.mxu0 %v1413_v2  ;;  %1261 = vmatprep.mubr.msk.f32.mxu0 %vm1367_vm1, %v1366_v0 }
 0x56e   :  { %1255 = vmatprep.subr.mxu0 %v1366_v0 }
 0x56f   :  { %1256 = vmatpush3.msra.mxu0 %v1428_v4 }
 0x570   :  { %1257 = vmatprep.subr.mxu0 %v1366_v0 }
 0x571   :  { %1258 = vmatpush3.msra.mxu0 %v1441_v7 }
 0x572   :  { %1259 = vmatprep.subr.mxu0 %v1366_v0 }
 0x573   :  { %1260 = vmatpush3.msra.mxu0 %v1449_v8 }
 0x574   :  { %1275 = vmatprep.subr.mxu0 %v1366_v0 }
 0x62c   :  { %v489_v1 = vpop.f32.mrf.mxu0 }
 0x62d   :  { %v493_v3 = vadd.f32 %v489_v1, %v146_v63 }
 0x62e   :  { %v1241_v5 = vpop.f32.mrf.mxu0 }
 0x62f   :  { %1318 = vtanh.f32 %v493_v3  ;;  %v1126_v9 = vmul.f32 -1.442695, %v493_v3 }
 0x631   :  { %1320 = vpow2.f32 %v1126_v9 }
 0x63c   :  { %v1319_v6 = vpop.eup %1318 }
 0x63d   :  { %503 = vrot.lane.b32.xlu1 %v1319_v6, %s1368_s13 }
 0x63e   :  { %v1321_v10 = vpop.eup %1320 }
 0x63f   :  { %v497_v12 = vadd.f32 1.0, %v1321_v10 }
 0x641   :  { %1322 = vrcp.f32 %v497_v12 }
 0x64e   :  { %v1323_v13 = vpop.eup %1322 }
 0x64f   :  { %v501_v16 = vmul.f32 %v1323_v13, %v399_v46 }
 0x6af   :  { %v504_v14 = vpop.permute.xlu1 %503 }
 0x6b0   :  { %v506_v15 = vmul.f32 %v1323_v13, %v504_v14 }
 0x6b2   :  { %508 = vrot.lane.b32.xlu0 %v506_v15, %s1369_s14 }
 0x724   :  { %v509_v17 = vpop.permute.xlu0 %508 }
 0x725   :  { %v511_v18 = vadd.f32 %v509_v17, %v501_v16  ;;  %v166_v16 = vadd.f32 %v1478_v11, %v1553_v62 }
 0x727   :  { %1324 = vtanh.f32 %v511_v18 }
 0x734   :  { %v1325_v19 = vpop.eup %1324 }
 0x735   :  { %514 = vrot.lane.b32.xlu1 %v1325_v19, %s1368_s13 }
 0x7a7   :  { %v515_v20 = vpop.permute.xlu1 %514 }
 0x7a8   :  { %v517_v21 = vmul.f32 %v1323_v13, %v515_v20 }
 0x7aa   :  { %526 = vrot.lane.b32.xlu0 %v517_v21, %s1369_s14 }
 0x81c   :  { %v527_v22 = vpop.permute.xlu0 %526 }
 0x81d   :  { %1127 = vst.msk [vmem:[%s1660_s4 + $0x10] sm:$0xff] %vm24_vm0, %v527_v22  ;;  %1251 = vmatmul.mubr.msk.f32.vlgmr.msra.gmra.mxu1 %vm24_vm0, %v527_v22 }
 0x81e   :  { %1265 = vmatpush3.msra.mxu1 %v1413_v2  ;;  %1272 = vmatprep.mubr.msk.f32.mxu1 %vm1367_vm1, %v1366_v0 }
 0x81f   :  { %1266 = vmatprep.subr.mxu1 %v1366_v0 }
 0x820   :  { %1267 = vmatpush3.msra.mxu1 %v1428_v4 }
 0x821   :  { %1268 = vmatprep.subr.mxu1 %v1366_v0 }
 0x822   :  { %1269 = vmatpush3.msra.mxu1 %v1441_v7 }
 0x823   :  { %1270 = vmatprep.subr.mxu1 %v1366_v0 }
 0x824   :  { %1271 = vmatpush3.msra.mxu1 %v1449_v8 }
 0x825   :  { %1286 = vmatprep.subr.mxu1 %v1366_v0 }
 0x8dd   :  { %v601_v24 = vpop.f32.mrf.mxu1 }
 0x8de   :  { %v605_v25 = vadd.f32 %v601_v24, %v151_v23 }
 0x8df   :  { %v1252_v26 = vpop.f32.mrf.mxu1 }
 0x8e0   :  { %1326 = vtanh.f32 %v605_v25  ;;  %v1129_v28 = vmul.f32 -1.442695, %v605_v25 }
 0x8e2   :  { %1328 = vpow2.f32 %v1129_v28 }
 0x8ed   :  { %v1327_v27 = vpop.eup %1326 }
 0x8ee   :  { %615 = vrot.lane.b32.xlu1 %v1327_v27, %s1368_s13 }
 0x8ef   :  { %v1329_v29 = vpop.eup %1328 }
 0x8f0   :  { %v609_v30 = vadd.f32 1.0, %v1329_v29 }
 0x8f2   :  { %1330 = vrcp.f32 %v609_v30 }
 0x8ff   :  { %v1331_v31 = vpop.eup %1330 }
 0x900   :  { %v613_v34 = vmul.f32 %v1331_v31, %v511_v18 }
 0x960   :  { %v616_v32 = vpop.permute.xlu1 %615 }
 0x961   :  { %v618_v33 = vmul.f32 %v1331_v31, %v616_v32 }
 0x963   :  { %620 = vrot.lane.b32.xlu0 %v618_v33, %s1369_s14  ;;  %v171_v33 = vadd.f32 %v1551_v61, %v1478_v11 }
 0x9d5   :  { %v621_v35 = vpop.permute.xlu0 %620 }
 0x9d6   :  { %v623_v36 = vadd.f32 %v621_v35, %v613_v34 }
 0x9d8   :  { %1332 = vtanh.f32 %v623_v36 }
 0x9e5   :  { %v1333_v37 = vpop.eup %1332 }
 0x9e6   :  { %626 = vrot.lane.b32.xlu1 %v1333_v37, %s1368_s13 }
 0xa58   :  { %v627_v38 = vpop.permute.xlu1 %626 }
 0xa59   :  { %v629_v39 = vmul.f32 %v1331_v31, %v627_v38 }
 0xa5b   :  { %638 = vrot.lane.b32.xlu0 %v629_v39, %s1369_s14 }
 0xacd   :  { %v639_v40 = vpop.permute.xlu0 %638 }
 0xace   :  { %1130 = vst.msk [vmem:[%s1660_s4 + $0x18] sm:$0xff] %vm24_vm0, %v639_v40  ;;  %1262 = vmatmul.mubr.msk.f32.vlgmr.msra.gmra.mxu0 %vm24_vm0, %v639_v40 }
 0xacf   :  { %1276 = vmatpush3.msra.mxu0 %v1413_v2  ;;  %1283 = vmatprep.mubr.msk.f32.mxu0 %vm1367_vm1, %v1366_v0 }
 0xad0   :  { %1277 = vmatprep.subr.mxu0 %v1366_v0 }
 0xad1   :  { %1278 = vmatpush3.msra.mxu0 %v1428_v4 }
 0xad2   :  { %1279 = vmatprep.subr.mxu0 %v1366_v0 }
 0xad3   :  { %1280 = vmatpush3.msra.mxu0 %v1441_v7 }
 0xad4   :  { %1281 = vmatprep.subr.mxu0 %v1366_v0 }
 0xad5   :  { %1282 = vmatpush3.msra.mxu0 %v1449_v8 }
 0xb8e   :  { %v713_v42 = vpop.f32.mrf.mxu0 }
 0xb8f   :  { %v717_v43 = vadd.f32 %v713_v42, %v156_v41 }
 0xb90   :  { %v1263_v44 = vpop.f32.mrf.mxu0 }
 0xb91   :  { %1334 = vtanh.f32 %v717_v43  ;;  %v1132_v46 = vmul.f32 -1.442695, %v717_v43 }
 0xb93   :  { %1336 = vpow2.f32 %v1132_v46 }
 0xb9e   :  { %v1335_v45 = vpop.eup %1334 }
 0xb9f   :  { %727 = vrot.lane.b32.xlu1 %v1335_v45, %s1368_s13 }
 0xba0   :  { %v1337_v47 = vpop.eup %1336 }
 0xba1   :  { %v721_v48 = vadd.f32 1.0, %v1337_v47 }
 0xba3   :  { %1338 = vrcp.f32 %v721_v48 }
 0xbb0   :  { %v1339_v49 = vpop.eup %1338 }
 0xbb1   :  { %v725_v52 = vmul.f32 %v1339_v49, %v623_v36 }
 0xc11   :  { %v728_v50 = vpop.permute.xlu1 %727 }
 0xc12   :  { %v730_v51 = vmul.f32 %v1339_v49, %v728_v50 }
 0xc14   :  { %732 = vrot.lane.b32.xlu0 %v730_v51, %s1369_s14 }
 0xc86   :  { %v733_v53 = vpop.permute.xlu0 %732 }
 0xc87   :  { %v735_v54 = vadd.f32 %v733_v53, %v725_v52 }
 0xc89   :  { %1340 = vtanh.f32 %v735_v54 }
 0xc96   :  { %v1341_v55 = vpop.eup %1340 }
 0xc97   :  { %738 = vrot.lane.b32.xlu1 %v1341_v55, %s1368_s13 }
 0xd09   :  { %v739_v56 = vpop.permute.xlu1 %738 }
 0xd0a   :  { %v741_v57 = vmul.f32 %v1339_v49, %v739_v56 }
 0xd0c   :  { %750 = vrot.lane.b32.xlu0 %v741_v57, %s1369_s14 }
 0xd7e   :  { %v751_v58 = vpop.permute.xlu0 %750 }
 0xd7f   :  { %1133 = vst.msk [vmem:[%s1660_s4 + $0x20] sm:$0xff] %vm24_vm0, %v751_v58  ;;  %1273 = vmatmul.mubr.msk.f32.vlgmr.msra.gmra.mxu1 %vm24_vm0, %v751_v58 }
 0xd80   :  { %1287 = vmatpush3.msra.mxu1 %v1413_v2  ;;  %1294 = vmatprep.mubr.msk.f32.mxu1 %vm1367_vm1, %v1366_v0 }
 0xd81   :  { %1288 = vmatprep.subr.mxu1 %v1366_v0 }
 0xd82   :  { %1289 = vmatpush3.msra.mxu1 %v1428_v4 }
 0xd83   :  { %1290 = vmatprep.subr.mxu1 %v1366_v0 }
 0xd84   :  { %1291 = vmatpush3.msra.mxu1 %v1441_v7 }
 0xd85   :  { %1292 = vmatprep.subr.mxu1 %v1366_v0 }
 0xd86   :  { %1293 = vmatpush3.msra.mxu1 %v1449_v8 }
 0xe3f   :  { %v825_v63 = vpop.f32.mrf.mxu1 }
 0xe40   :  { %v829_v2 = vadd.f32 %v825_v63, %v161_v60 }
 0xe41   :  { %v1274_v1 = vpop.f32.mrf.mxu1 }
 0xe42   :  { %1342 = vtanh.f32 %v829_v2  ;;  %v1135_v5 = vmul.f32 -1.442695, %v829_v2 }
 0xe44   :  { %1344 = vpow2.f32 %v1135_v5 }
 0xe4f   :  { %v1343_v3 = vpop.eup %1342 }
 0xe50   :  { %839 = vrot.lane.b32.xlu1 %v1343_v3, %s1368_s13 }
 0xe51   :  { %v1345_v4 = vpop.eup %1344 }
 0xe52   :  { %v833_v6 = vadd.f32 1.0, %v1345_v4 }
 0xe54   :  { %1346 = vrcp.f32 %v833_v6 }
 0xe61   :  { %v1347_v7 = vpop.eup %1346 }
 0xe62   :  { %v837_v8 = vmul.f32 %v1347_v7, %v735_v54 }
 0xec2   :  { %v840_v9 = vpop.permute.xlu1 %839 }
 0xec3   :  { %v842_v0 = vmul.f32 %v1347_v7, %v840_v9 }
 0xec5   :  { %844 = vrot.lane.b32.xlu0 %v842_v0, %s1369_s14 }
 0xf37   :  { %v845_v10 = vpop.permute.xlu0 %844 }
 0xf38   :  { %v847_v59 = vadd.f32 %v845_v10, %v837_v8 }
 0xf3a   :  { %1348 = vtanh.f32 %v847_v59 }
 0xf47   :  { %v1349_v12 = vpop.eup %1348 }
 0xf48   :  { %850 = vrot.lane.b32.xlu1 %v1349_v12, %s1368_s13 }
 0xfba   :  { %v851_v13 = vpop.permute.xlu1 %850 }
 0xfbb   :  { %v853_v14 = vmul.f32 %v1347_v7, %v851_v13 }
 0xfbd   :  { %862 = vrot.lane.b32.xlu0 %v853_v14, %s1369_s14 }
0x102f   :  { %v863_v15 = vpop.permute.xlu0 %862 }
0x1030   :  { %1136 = vst.msk [vmem:[%s1660_s4 + $0x28] sm:$0xff] %vm24_vm0, %v863_v15  ;;  %1284 = vmatmul.mubr.msk.f32.vlgmr.msra.gmra.mxu0 %vm24_vm0, %v863_v15 }
0x10f0   :  { %v937_v17 = vpop.f32.mrf.mxu0 }
0x10f1   :  { %v941_v18 = vadd.f32 %v937_v17, %v166_v16 }
0x10f2   :  { %v1285_v19 = vpop.f32.mrf.mxu0 }
0x10f3   :  { %1350 = vtanh.f32 %v941_v18  ;;  %v1138_v21 = vmul.f32 -1.442695, %v941_v18 }
0x10f5   :  { %1352 = vpow2.f32 %v1138_v21 }
0x1100   :  { %v1351_v20 = vpop.eup %1350 }
0x1101   :  { %951 = vrot.lane.b32.xlu1 %v1351_v20, %s1368_s13 }
0x1102   :  { %v1353_v22 = vpop.eup %1352 }
0x1103   :  { %v945_v23 = vadd.f32 1.0, %v1353_v22 }
0x1105   :  { %1354 = vrcp.f32 %v945_v23 }
0x1112   :  { %v1355_v24 = vpop.eup %1354 }
0x1113   :  { %v949_v27 = vmul.f32 %v1355_v24, %v847_v59 }
0x1173   :  { %v952_v25 = vpop.permute.xlu1 %951 }
0x1174   :  { %v954_v26 = vmul.f32 %v1355_v24, %v952_v25 }
0x1176   :  { %956 = vrot.lane.b32.xlu0 %v954_v26, %s1369_s14 }
0x11e8   :  { %v957_v28 = vpop.permute.xlu0 %956 }
0x11e9   :  { %v959_v62 = vadd.f32 %v957_v28, %v949_v27 }
0x11eb   :  { %1356 = vtanh.f32 %v959_v62 }
0x11f8   :  { %v1357_v29 = vpop.eup %1356 }
0x11f9   :  { %962 = vrot.lane.b32.xlu1 %v1357_v29, %s1368_s13 }
0x126b   :  { %v963_v30 = vpop.permute.xlu1 %962 }
0x126c   :  { %v965_v31 = vmul.f32 %v1355_v24, %v963_v30 }
0x126e   :  { %974 = vrot.lane.b32.xlu0 %v965_v31, %s1369_s14 }
0x12e0   :  { %v975_v32 = vpop.permute.xlu0 %974 }
0x12e1   :  { %1139 = vst.msk [vmem:[%s1660_s4 + $0x30] sm:$0xff] %vm24_vm0, %v975_v32  ;;  %1295 = vmatmul.mubr.msk.f32.vlgmr.msra.gmra.mxu1 %vm24_vm0, %v975_v32 }
0x13a1   :  { %v1049_v34 = vpop.f32.mrf.mxu1 }
0x13a2   :  { %v1053_v35 = vadd.f32 %v1049_v34, %v171_v33 }
0x13a3   :  { %v1296_v36 = vpop.f32.mrf.mxu1 }
0x13a4   :  { %1358 = vtanh.f32 %v1053_v35  ;;  %v1141_v38 = vmul.f32 -1.442695, %v1053_v35 }
0x13a6   :  { %1360 = vpow2.f32 %v1141_v38 }
0x13b1   :  { %v1359_v37 = vpop.eup %1358 }
0x13b2   :  { %1063 = vrot.lane.b32.xlu1 %v1359_v37, %s1368_s13 }
0x13b3   :  { %v1361_v39 = vpop.eup %1360 }
0x13b4   :  { %v1057_v40 = vadd.f32 1.0, %v1361_v39 }
0x13b6   :  { %1362 = vrcp.f32 %v1057_v40 }
0x13c3   :  { %v1363_v41 = vpop.eup %1362 }
0x13c4   :  { %v1061_v44 = vmul.f32 %v1363_v41, %v959_v62 }
0x1424   :  { %v1064_v42 = vpop.permute.xlu1 %1063 }
0x1425   :  { %v1066_v43 = vmul.f32 %v1363_v41, %v1064_v42 }
0x1427   :  { %1068 = vrot.lane.b32.xlu0 %v1066_v43, %s1369_s14 }
0x1499   :  { %v1069_v45 = vpop.permute.xlu0 %1068 }
0x149a   :  { %v1071_v11 = vadd.f32 %v1069_v45, %v1061_v44 }
0x149c   :  { %1364 = vtanh.f32 %v1071_v11 }
0x14a9   :  { %v1365_v61 = vpop.eup %1364 }
0x14aa   :  { %1074 = vrot.lane.b32.xlu1 %v1365_v61, %s1368_s13 }
0x14ae   :  { %1093 = vrot.lane.b32.xlu1 %v1071_v11, %s1370_s3 }
0x151c   :  { %v1075_v46 = vpop.permute.xlu1 %1074 }
0x151d   :  { %v1077_v47 = vmul.f32 %v1363_v41, %v1075_v46 }
0x151f   :  { %1086 = vrot.lane.b32.xlu0 %v1077_v47, %s1369_s14 }
0x1520   :  { %v1094_v48 = vpop.permute.xlu1 %1093 }
0x1521   :  { %1096 = vst.msk [vmem:[#allocation3] sm:$0xff] %vm24_vm0, %v1094_v48  ;;  %1098 = vst.msk [vmem:[%s1661_s6] sm:$0xff] %vm24_vm0, %v1094_v48 }
0x1591   :  { %v1087_v49 = vpop.permute.xlu0 %1086 }
0x1592   :  { %1142 = vst.msk [vmem:[%s1660_s4 + $0x38] sm:$0xff] %vm24_vm0, %v1087_v49  ;;  %1091 = vst.msk [vmem:[#allocation2] sm:$0xff] %vm24_vm0, %v1087_v49 }
0x1593   :  { %1097 = vst.msk [vmem:[%s1662_s5] sm:$0xff] %vm24_vm0, %v1087_v49 }

</bundles_post_ra>
